<compile_context>
chip_gen: v7x
topology: tpu7x:2x2x1
jax: 0.10.0
libtpu: 0.0.40
codegen_flags: <defaults>
</compile_context>

<pallas_src>
import math

import jax
import jax.numpy as jnp
from jax import lax
from jax.experimental import pallas as pl
from jax.experimental.pallas import tpu as pltpu


def _round_up(x, m):
    return (x + m - 1) // m * m


def _interp_matrix(n_in, n_out):
    """Row-interpolation matrix for bilinear upsampling, align_corners=True."""
    o = jnp.arange(n_out, dtype=jnp.float32)
    if n_out > 1:
        src = o * (n_in - 1) / (n_out - 1)
    else:
        src = jnp.zeros_like(o)
    i0 = jnp.clip(jnp.floor(src).astype(jnp.int32), 0, n_in - 1)
    i1 = jnp.clip(i0 + 1, 0, n_in - 1)
    frac = src - i0.astype(jnp.float32)
    rows = jnp.arange(n_out)
    A = jnp.zeros((n_out, n_in), jnp.float32)
    A = A.at[rows, i0].add(1.0 - frac)
    A = A.at[rows, i1].add(frac)
    return A


def _interp_taps(n_in, n_out):
    """Static (i0, i1, frac) taps of the bilinear row interpolation."""
    taps = []
    for o in range(n_out):
        src = (o * (n_in - 1) / (n_out - 1)) if n_out > 1 else 0.0
        i0 = min(int(math.floor(src)), n_in - 1)
        i1 = min(i0 + 1, n_in - 1)
        taps.append((i0, i1, float(src - i0)))
    return taps


# ---------------------------------------------------------------------------
# Fused Up.forward  (inputs/outputs in PyTorch NCHW convention)
# ---------------------------------------------------------------------------
def up_forward(x1, x2, params):
    N, C1, H1, W1 = x1.shape
    Nb, C1b, H2, W2 = x2.shape
    assert Nb == N and C1b == C1
    H2u, W2u = 2 * H1, 2 * W1
    diffY, diffX = H2 - H2u, W2 - W2u
    assert diffY >= 0 and diffX >= 0, "x2 must be >= upsampled x1 (no crop support)"
    pt, pb = diffY // 2, diffY - diffY // 2
    plft, prgt = diffX // 2, diffX - diffX // 2

    Cin = 2 * C1
    Cmid = params["w1"].shape[-1]
    Cout = params["w2"].shape[-1]

    S_int = H2 * W2                       # interior (output) pixels, row-major
    S_row = (H2 + 2) * W2                 # + one zero row above and below
    Spad = _round_up(S_row, 128)          # lane-dense flat length (zero tail)

    taps = _interp_taps(H1, H2u)          # static python taps for row interp
    f32 = jnp.float32

    # --- small constant operands (wrapper-side repack; all tiny) ------------
    Bt = _interp_matrix(W1, W2u).T.astype(f32)                   # (W1, W2u)
    w1t = jnp.transpose(params["w1"], (0, 1, 3, 2)).reshape(9, Cmid, Cin).astype(f32)
    w2t = jnp.transpose(params["w2"], (0, 1, 3, 2)).reshape(9, Cout, Cmid).astype(f32)
    s1 = params["s1"].reshape(Cmid, 1).astype(f32)
    b1 = params["b1"].reshape(Cmid, 1).astype(f32)
    s2 = params["s2"].reshape(Cout, 1).astype(f32)
    b2 = params["b2"].reshape(Cout, 1).astype(f32)

    # lane masks over the flat (row-padded) spatial axis
    lane = jnp.arange(Spad)
    col = lane % W2
    nleft = (col != 0).astype(f32).reshape(1, Spad)          # valid left neighbour
    nright = (col != W2 - 1).astype(f32).reshape(1, Spad)    # valid right neighbour
    inter = ((lane >= W2) & (lane < W2 + S_int)).astype(f32).reshape(1, Spad)

    # lane-dense input layouts (pure reshapes of NCHW -> no extra XLA passes)
    x1r = x1.reshape(N, C1 * H1, W1)
    x2r = x2.reshape(N, C1, S_int)

    def kernel(x1_ref, x2_ref, bt_ref, w1_ref, s1_ref, b1_ref,
               w2_ref, s2_ref, b2_ref, nl_ref, nr_ref, in_ref, o_ref):
        nl = nl_ref[...]
        nr = nr_ref[...]
        interior = in_ref[...]

        # 1) bilinear x2 upsample (align_corners=True), separable:
        #    columns via ONE matmul, rows via static 2-tap blends.
        t = jnp.dot(x1_ref[0].astype(f32), bt_ref[...],
                    preferred_element_type=f32)                  # (C1*H1, W2u)
        t3 = t.reshape(C1, H1, W2u)

        rows = []
        if pt:
            rows.append(jnp.zeros((C1, pt * W2), f32))
        for (i0, i1, fr) in taps:
            r = t3[:, i0, :]
            if fr != 0.0:
                r = r * (1.0 - fr) + t3[:, i1, :] * fr           # (C1, W2u)
            if diffX:                                            # center pad in W
                pieces = []
                if plft:
                    pieces.append(jnp.zeros((C1, plft), f32))
                pieces.append(r)
                if prgt:
                    pieces.append(jnp.zeros((C1, prgt), f32))
                r = jnp.concatenate(pieces, axis=1)              # (C1, W2)
            rows.append(r)
        if pb:
            rows.append(jnp.zeros((C1, pb * W2), f32))
        u_flat = jnp.concatenate(rows, axis=1)                   # (C1, S_int)

        # 2) channel concat [x2, up(x1)] + zero pad row above/below + zero tail
        #    -> flat padded conv input (Cin, Spad), spatial on lanes.
        x2v = x2_ref[0].astype(f32)                              # (C1, S_int)
        xin = jnp.concatenate(
            [jnp.zeros((Cin, W2), f32),
             jnp.concatenate([x2v, u_flat], axis=0),
             jnp.zeros((Cin, Spad - W2 - S_int), f32)], axis=1)  # (Cin, Spad)

        # 3) 3x3 conv = 9 shifted-tap matmuls accumulated in f32 (no im2col).
        #    dy/dx shifts are lane rotations of the flat layout; column
        #    wrap-around is masked, row wrap-around hits the zero pad rows.
        def conv3x3(x, w):       # x: (Ci, Spad), w: (9, Co, Ci) -> (Co, Spad)
            acc = jnp.zeros((w.shape[1], Spad), f32)
            k = 0
            for ky in range(3):
                for kx in range(3):
                    off = (ky - 1) * W2 + (kx - 1)
                    xs = x if off == 0 else pltpu.roll(x, (-off) % Spad, axis=1)
                    if kx == 0:
                        xs = xs * nl
                    elif kx == 2:
                        xs = xs * nr
                    acc = acc + jnp.dot(w[k], xs, preferred_element_type=f32)
                    k += 1
            return acc

        # TODO(synk): cast matmul operands to bf16 at large channel counts.
        y1 = conv3x3(xin, w1_ref[...])
        y1 = jnp.maximum(y1 * s1_ref[...] + b1_ref[...], 0.0) * interior
        y2 = conv3x3(y1, w2_ref[...])
        y2 = jnp.maximum(y2 * s2_ref[...] + b2_ref[...], 0.0)

        # lane-dense store: (Cout, H2*W2) with flat spatial (256) on lanes
        o_ref[0] = y2[:, W2:W2 + S_int].astype(o_ref.dtype)

    def full(shape):
        return pl.BlockSpec(shape, lambda n, _s=shape: (0,) * len(_s))

    out_flat = pl.pallas_call(
        kernel,
        out_shape=jax.ShapeDtypeStruct((N, Cout, S_int), jnp.float32),
        grid=(N,),
        in_specs=[
            pl.BlockSpec((1, C1 * H1, W1), lambda n: (n, 0, 0)),
            pl.BlockSpec((1, C1, S_int), lambda n: (n, 0, 0)),
            full((W1, W2u)),
            full((9, Cmid, Cin)),
            full((Cmid, 1)),
            full((Cmid, 1)),
            full((9, Cout, Cmid)),
            full((Cout, 1)),
            full((Cout, 1)),
            full((1, Spad)),
            full((1, Spad)),
            full((1, Spad)),
        ],
        out_specs=pl.BlockSpec((1, Cout, S_int), lambda n: (n, 0, 0)),
        compiler_params=pltpu.CompilerParams(
            dimension_semantics=("parallel",)),
    )(x1r, x2r, Bt, w1t, s1, b1, w2t, s2, b2, nleft, nright, inter)

    # free reshape back to NCHW (no slice / transpose pass)
    return out_flat.reshape(N, Cout, H2, W2)


# ---------------------------------------------------------------------------
# Pure-JAX reference (for correctness check)
# ---------------------------------------------------------------------------
def up_forward_ref(x1, x2, params):
    N, C, Hi, Wi = x1.shape
    A = _interp_matrix(Hi, 2 * Hi)
    B = _interp_matrix(Wi, 2 * Wi)
    x1u = jnp.einsum("oh,nchw,pw->ncop", A, x1, B)
    diffY = x2.shape[2] - x1u.shape[2]
    diffX = x2.shape[3] - x1u.shape[3]
    x1u = jnp.pad(x1u, ((0, 0), (0, 0),
                        (diffY // 2, diffY - diffY // 2),
                        (diffX // 2, diffX - diffX // 2)))
    x = jnp.concatenate([x2, x1u], axis=1)

    def conv_bn_relu(x, w_hwio, s, b):
        w_oihw = jnp.transpose(w_hwio, (3, 2, 0, 1))
        y = lax.conv_general_dilated(
            x, w_oihw, (1, 1), "SAME",
            dimension_numbers=("NCHW", "OIHW", "NCHW"))
        y = y * s[None, :, None, None] + b[None, :, None, None]
        return jnp.maximum(y, 0.0)

    h = conv_bn_relu(x, params["w1"], params["s1"], params["b1"])
    h = conv_bn_relu(h, params["w2"], params["s2"], params["b2"])
    return h


# ---------------------------------------------------------------------------
if __name__ == "__main__":
    # Up(in_channels=8, out_channels=4, bilinear=True):
    #   x1: (N, 4, 8, 8)   -- low-res features (in_channels // 2 channels)
    #   x2: (N, 4, 16, 16) -- skip connection  (in_channels // 2 channels)
    #   concat -> 8 channels, DoubleConv(8, 4, mid=4)
    N = 2
    in_channels, out_channels = 8, 4
    mid_channels = in_channels // 2
    H1 = W1 = 8
    H2 = W2 = 16
    eps = 1e-5

    key = jax.random.PRNGKey(0)
    ks = jax.random.split(key, 12)

    x1 = jax.random.normal(ks[0], (N, in_channels // 2, H1, W1), jnp.float32)
    x2 = jax.random.normal(ks[1], (N, in_channels // 2, H2, W2), jnp.float32)

    # Conv weights in HWIO layout; BN params (eval-mode running stats).
    w1 = 0.1 * jax.random.normal(ks[2], (3, 3, in_channels, mid_channels), jnp.float32)
    g1 = 1.0 + 0.1 * jax.random.normal(ks[3], (mid_channels,), jnp.float32)
    be1 = 0.1 * jax.random.normal(ks[4], (mid_channels,), jnp.float32)
    m1 = 0.1 * jax.random.normal(ks[5], (mid_channels,), jnp.float32)
    v1 = jax.random.uniform(ks[6], (mid_channels,), jnp.float32, 0.5, 1.5)

    w2 = 0.1 * jax.random.normal(ks[7], (3, 3, mid_channels, out_channels), jnp.float32)
    g2 = 1.0 + 0.1 * jax.random.normal(ks[8], (out_channels,), jnp.float32)
    be2 = 0.1 * jax.random.normal(ks[9], (out_channels,), jnp.float32)
    m2 = 0.1 * jax.random.normal(ks[10], (out_channels,), jnp.float32)
    v2 = jax.random.uniform(ks[11], (out_channels,), jnp.float32, 0.5, 1.5)

    # Fold BN into per-channel scale/bias:  y = conv(x) * s + b
    s1 = g1 / jnp.sqrt(v1 + eps)
    b1 = be1 - m1 * s1
    s2 = g2 / jnp.sqrt(v2 + eps)
    b2 = be2 - m2 * s2

    params = {"w1": w1, "s1": s1, "b1": b1, "w2": w2, "s2": s2, "b2": b2}

    out = jax.jit(up_forward)(x1, x2, params)
    out = jax.block_until_ready(out)

    ref = up_forward_ref(x1, x2, params)
    assert out.shape == (N, out_channels, H2, W2), out.shape
    assert jnp.all(jnp.isfinite(out))
    assert jnp.allclose(out, ref, atol=1e-3, rtol=1e-3), \
        float(jnp.max(jnp.abs(out - ref)))

    print("KERNEL_OK")
</pallas_src>

<mosaic_0001>
module attributes {stable_mosaic.version = 11 : i64} {
  func.func private @main(%arg0: i32) attributes {dimension_semantics = [#tpu.dimension_semantics<core_parallel>], iteration_bounds = array<i64: 2>, tpu.core_type = #tpu.core_type<sc_scalar_subcore>, window_params = []} {
    return
  }
}

module attributes {stable_mosaic.version = 11 : i64} {
  func.func private @main(%arg0: i32) attributes {dimension_semantics = [#tpu.dimension_semantics<core_parallel>], iteration_bounds = array<i64: 2>, tpu.core_type = #tpu.core_type<sc_scalar_subcore>, window_params = []} {
    return
  }
}

module attributes {stable_mosaic.version = 11 : i64} {
  func.func @kernel(%arg0: i32, %arg1: memref<1x32x8xf32, #tpu.memory_space<vmem>>, %arg2: memref<1x4x256xf32, #tpu.memory_space<vmem>>, %arg3: memref<8x16xf32, #tpu.memory_space<vmem>>, %arg4: memref<9x4x8xf32, #tpu.memory_space<vmem>>, %arg5: memref<4x1xf32, #tpu.memory_space<vmem>>, %arg6: memref<4x1xf32, #tpu.memory_space<vmem>>, %arg7: memref<9x4x4xf32, #tpu.memory_space<vmem>>, %arg8: memref<4x1xf32, #tpu.memory_space<vmem>>, %arg9: memref<4x1xf32, #tpu.memory_space<vmem>>, %arg10: memref<1x384xf32, #tpu.memory_space<vmem>>, %arg11: memref<1x384xf32, #tpu.memory_space<vmem>>, %arg12: memref<1x384xf32, #tpu.memory_space<vmem>>, %arg13: memref<1x4x256xf32, #tpu.memory_space<vmem>>) attributes {dimension_semantics = [#tpu.dimension_semantics<parallel>], iteration_bounds = array<i64: 2>, scalar_prefetch = 0 : i64, scratch_operands = 0 : i64, tpu.core_type = #tpu.core_type<tc>, window_params = [{transform_indices = @transform_0, window_bounds = array<i64: 1, 32, 8>}, {transform_indices = @transform_1, window_bounds = array<i64: 1, 4, 256>}, {pipeline_mode = #tpu.pipeline_mode<synchronous>, transform_indices = @transform_2, window_bounds = array<i64: 8, 16>}, {pipeline_mode = #tpu.pipeline_mode<synchronous>, transform_indices = @transform_3, window_bounds = array<i64: 9, 4, 8>}, {pipeline_mode = #tpu.pipeline_mode<synchronous>, transform_indices = @transform_4, window_bounds = array<i64: 4, 1>}, {pipeline_mode = #tpu.pipeline_mode<synchronous>, transform_indices = @transform_5, window_bounds = array<i64: 4, 1>}, {pipeline_mode = #tpu.pipeline_mode<synchronous>, transform_indices = @transform_6, window_bounds = array<i64: 9, 4, 4>}, {pipeline_mode = #tpu.pipeline_mode<synchronous>, transform_indices = @transform_7, window_bounds = array<i64: 4, 1>}, {pipeline_mode = #tpu.pipeline_mode<synchronous>, transform_indices = @transform_8, window_bounds = array<i64: 4, 1>}, {pipeline_mode = #tpu.pipeline_mode<synchronous>, transform_indices = @transform_9, window_bounds = array<i64: 1, 384>}, {pipeline_mode = #tpu.pipeline_mode<synchronous>, transform_indices = @transform_10, window_bounds = array<i64: 1, 384>}, {pipeline_mode = #tpu.pipeline_mode<synchronous>, transform_indices = @transform_11, window_bounds = array<i64: 1, 384>}, {transform_indices = @transform_12, window_bounds = array<i64: 1, 4, 256>}]} {
    %c0 = arith.constant 0 : index
    %c0_0 = arith.constant 0 : index
    %0 = vector.load %arg10[%c0, %c0_0] : memref<1x384xf32, #tpu.memory_space<vmem>>, vector<1x384xf32>
    %c0_1 = arith.constant 0 : index
    %c0_2 = arith.constant 0 : index
    %1 = vector.load %arg11[%c0_1, %c0_2] : memref<1x384xf32, #tpu.memory_space<vmem>>, vector<1x384xf32>
    %c0_3 = arith.constant 0 : index
    %c0_4 = arith.constant 0 : index
    %2 = vector.load %arg12[%c0_3, %c0_4] : memref<1x384xf32, #tpu.memory_space<vmem>>, vector<1x384xf32>
    %c0_5 = arith.constant 0 : index
    %c0_6 = arith.constant 0 : index
    %c0_7 = arith.constant 0 : index
    %3 = vector.load %arg1[%c0_5, %c0_6, %c0_7] : memref<1x32x8xf32, #tpu.memory_space<vmem>>, vector<1x32x8xf32>
    %4 = vector.shape_cast %3 : vector<1x32x8xf32> to vector<32x8xf32>
    %c0_8 = arith.constant 0 : index
    %c0_9 = arith.constant 0 : index
    %5 = vector.load %arg3[%c0_8, %c0_9] : memref<8x16xf32, #tpu.memory_space<vmem>>, vector<8x16xf32>
    %cst = arith.constant dense<0.000000e+00> : vector<32x16xf32>
    %6 = tpu.matmul %4, %5, %cst {dimension_numbers = #tpu.dot_dimension_numbers<[1], [0], [0], [1], [0, 0, 1, 1], [], []>} : vector<32x8xf32>, vector<8x16xf32>, vector<32x16xf32> -> vector<32x16xf32>
    %7 = vector.shape_cast %6 : vector<32x16xf32> to vector<4x8x16xf32>
    %8 = vector.extract_strided_slice %7 {offsets = [0, 0, 0], sizes = [4, 1, 16], strides = [1, 1, 1]} : vector<4x8x16xf32> to vector<4x1x16xf32>
    %9 = vector.shape_cast %8 : vector<4x1x16xf32> to vector<4x16xf32>
    %10 = vector.extract_strided_slice %7 {offsets = [0, 0, 0], sizes = [4, 1, 16], strides = [1, 1, 1]} : vector<4x8x16xf32> to vector<4x1x16xf32>
    %11 = vector.shape_cast %10 : vector<4x1x16xf32> to vector<4x16xf32>
    %cst_10 = arith.constant 0.533333361 : f32
    %12 = vector.broadcast %cst_10 : f32 to vector<4x16xf32>
    %13 = arith.mulf %11, %12 : vector<4x16xf32>
    %14 = vector.extract_strided_slice %7 {offsets = [0, 1, 0], sizes = [4, 1, 16], strides = [1, 1, 1]} : vector<4x8x16xf32> to vector<4x1x16xf32>
    %15 = vector.shape_cast %14 : vector<4x1x16xf32> to vector<4x16xf32>
    %cst_11 = arith.constant 0.466666669 : f32
    %16 = vector.broadcast %cst_11 : f32 to vector<4x16xf32>
    %17 = arith.mulf %15, %16 : vector<4x16xf32>
    %18 = arith.addf %13, %17 : vector<4x16xf32>
    %19 = vector.extract_strided_slice %7 {offsets = [0, 0, 0], sizes = [4, 1, 16], strides = [1, 1, 1]} : vector<4x8x16xf32> to vector<4x1x16xf32>
    %20 = vector.shape_cast %19 : vector<4x1x16xf32> to vector<4x16xf32>
    %cst_12 = arith.constant 0.0666666701 : f32
    %21 = vector.broadcast %cst_12 : f32 to vector<4x16xf32>
    %22 = arith.mulf %20, %21 : vector<4x16xf32>
    %23 = vector.extract_strided_slice %7 {offsets = [0, 1, 0], sizes = [4, 1, 16], strides = [1, 1, 1]} : vector<4x8x16xf32> to vector<4x1x16xf32>
    %24 = vector.shape_cast %23 : vector<4x1x16xf32> to vector<4x16xf32>
    %cst_13 = arith.constant 0.933333337 : f32
    %25 = vector.broadcast %cst_13 : f32 to vector<4x16xf32>
    %26 = arith.mulf %24, %25 : vector<4x16xf32>
    %27 = arith.addf %22, %26 : vector<4x16xf32>
    %28 = vector.extract_strided_slice %7 {offsets = [0, 1, 0], sizes = [4, 1, 16], strides = [1, 1, 1]} : vector<4x8x16xf32> to vector<4x1x16xf32>
    %29 = vector.shape_cast %28 : vector<4x1x16xf32> to vector<4x16xf32>
    %cst_14 = arith.constant 6.000000e-01 : f32
    %30 = vector.broadcast %cst_14 : f32 to vector<4x16xf32>
    %31 = arith.mulf %29, %30 : vector<4x16xf32>
    %32 = vector.extract_strided_slice %7 {offsets = [0, 2, 0], sizes = [4, 1, 16], strides = [1, 1, 1]} : vector<4x8x16xf32> to vector<4x1x16xf32>
    %33 = vector.shape_cast %32 : vector<4x1x16xf32> to vector<4x16xf32>
    %cst_15 = arith.constant 4.000000e-01 : f32
    %34 = vector.broadcast %cst_15 : f32 to vector<4x16xf32>
    %35 = arith.mulf %33, %34 : vector<4x16xf32>
    %36 = arith.addf %31, %35 : vector<4x16xf32>
    %37 = vector.extract_strided_slice %7 {offsets = [0, 1, 0], sizes = [4, 1, 16], strides = [1, 1, 1]} : vector<4x8x16xf32> to vector<4x1x16xf32>
    %38 = vector.shape_cast %37 : vector<4x1x16xf32> to vector<4x16xf32>
    %cst_16 = arith.constant 0.13333334 : f32
    %39 = vector.broadcast %cst_16 : f32 to vector<4x16xf32>
    %40 = arith.mulf %38, %39 : vector<4x16xf32>
    %41 = vector.extract_strided_slice %7 {offsets = [0, 2, 0], sizes = [4, 1, 16], strides = [1, 1, 1]} : vector<4x8x16xf32> to vector<4x1x16xf32>
    %42 = vector.shape_cast %41 : vector<4x1x16xf32> to vector<4x16xf32>
    %cst_17 = arith.constant 0.866666674 : f32
    %43 = vector.broadcast %cst_17 : f32 to vector<4x16xf32>
    %44 = arith.mulf %42, %43 : vector<4x16xf32>
    %45 = arith.addf %40, %44 : vector<4x16xf32>
    %46 = vector.extract_strided_slice %7 {offsets = [0, 2, 0], sizes = [4, 1, 16], strides = [1, 1, 1]} : vector<4x8x16xf32> to vector<4x1x16xf32>
    %47 = vector.shape_cast %46 : vector<4x1x16xf32> to vector<4x16xf32>
    %cst_18 = arith.constant 0.666666686 : f32
    %48 = vector.broadcast %cst_18 : f32 to vector<4x16xf32>
    %49 = arith.mulf %47, %48 : vector<4x16xf32>
    %50 = vector.extract_strided_slice %7 {offsets = [0, 3, 0], sizes = [4, 1, 16], strides = [1, 1, 1]} : vector<4x8x16xf32> to vector<4x1x16xf32>
    %51 = vector.shape_cast %50 : vector<4x1x16xf32> to vector<4x16xf32>
    %cst_19 = arith.constant 0.333333343 : f32
    %52 = vector.broadcast %cst_19 : f32 to vector<4x16xf32>
    %53 = arith.mulf %51, %52 : vector<4x16xf32>
    %54 = arith.addf %49, %53 : vector<4x16xf32>
    %55 = vector.extract_strided_slice %7 {offsets = [0, 2, 0], sizes = [4, 1, 16], strides = [1, 1, 1]} : vector<4x8x16xf32> to vector<4x1x16xf32>
    %56 = vector.shape_cast %55 : vector<4x1x16xf32> to vector<4x16xf32>
    %cst_20 = arith.constant 2.000000e-01 : f32
    %57 = vector.broadcast %cst_20 : f32 to vector<4x16xf32>
    %58 = arith.mulf %56, %57 : vector<4x16xf32>
    %59 = vector.extract_strided_slice %7 {offsets = [0, 3, 0], sizes = [4, 1, 16], strides = [1, 1, 1]} : vector<4x8x16xf32> to vector<4x1x16xf32>
    %60 = vector.shape_cast %59 : vector<4x1x16xf32> to vector<4x16xf32>
    %cst_21 = arith.constant 8.000000e-01 : f32
    %61 = vector.broadcast %cst_21 : f32 to vector<4x16xf32>
    %62 = arith.mulf %60, %61 : vector<4x16xf32>
    %63 = arith.addf %58, %62 : vector<4x16xf32>
    %64 = vector.extract_strided_slice %7 {offsets = [0, 3, 0], sizes = [4, 1, 16], strides = [1, 1, 1]} : vector<4x8x16xf32> to vector<4x1x16xf32>
    %65 = vector.shape_cast %64 : vector<4x1x16xf32> to vector<4x16xf32>
    %cst_22 = arith.constant 0.733333349 : f32
    %66 = vector.broadcast %cst_22 : f32 to vector<4x16xf32>
    %67 = arith.mulf %65, %66 : vector<4x16xf32>
    %68 = vector.extract_strided_slice %7 {offsets = [0, 4, 0], sizes = [4, 1, 16], strides = [1, 1, 1]} : vector<4x8x16xf32> to vector<4x1x16xf32>
    %69 = vector.shape_cast %68 : vector<4x1x16xf32> to vector<4x16xf32>
    %cst_23 = arith.constant 0.266666681 : f32
    %70 = vector.broadcast %cst_23 : f32 to vector<4x16xf32>
    %71 = arith.mulf %69, %70 : vector<4x16xf32>
    %72 = arith.addf %67, %71 : vector<4x16xf32>
    %73 = vector.extract_strided_slice %7 {offsets = [0, 3, 0], sizes = [4, 1, 16], strides = [1, 1, 1]} : vector<4x8x16xf32> to vector<4x1x16xf32>
    %74 = vector.shape_cast %73 : vector<4x1x16xf32> to vector<4x16xf32>
    %cst_24 = arith.constant 0.266666681 : f32
    %75 = vector.broadcast %cst_24 : f32 to vector<4x16xf32>
    %76 = arith.mulf %74, %75 : vector<4x16xf32>
    %77 = vector.extract_strided_slice %7 {offsets = [0, 4, 0], sizes = [4, 1, 16], strides = [1, 1, 1]} : vector<4x8x16xf32> to vector<4x1x16xf32>
    %78 = vector.shape_cast %77 : vector<4x1x16xf32> to vector<4x16xf32>
    %cst_25 = arith.constant 0.733333349 : f32
    %79 = vector.broadcast %cst_25 : f32 to vector<4x16xf32>
    %80 = arith.mulf %78, %79 : vector<4x16xf32>
    %81 = arith.addf %76, %80 : vector<4x16xf32>
    %82 = vector.extract_strided_slice %7 {offsets = [0, 4, 0], sizes = [4, 1, 16], strides = [1, 1, 1]} : vector<4x8x16xf32> to vector<4x1x16xf32>
    %83 = vector.shape_cast %82 : vector<4x1x16xf32> to vector<4x16xf32>
    %cst_26 = arith.constant 8.000000e-01 : f32
    %84 = vector.broadcast %cst_26 : f32 to vector<4x16xf32>
    %85 = arith.mulf %83, %84 : vector<4x16xf32>
    %86 = vector.extract_strided_slice %7 {offsets = [0, 5, 0], sizes = [4, 1, 16], strides = [1, 1, 1]} : vector<4x8x16xf32> to vector<4x1x16xf32>
    %87 = vector.shape_cast %86 : vector<4x1x16xf32> to vector<4x16xf32>
    %cst_27 = arith.constant 2.000000e-01 : f32
    %88 = vector.broadcast %cst_27 : f32 to vector<4x16xf32>
    %89 = arith.mulf %87, %88 : vector<4x16xf32>
    %90 = arith.addf %85, %89 : vector<4x16xf32>
    %91 = vector.extract_strided_slice %7 {offsets = [0, 4, 0], sizes = [4, 1, 16], strides = [1, 1, 1]} : vector<4x8x16xf32> to vector<4x1x16xf32>
    %92 = vector.shape_cast %91 : vector<4x1x16xf32> to vector<4x16xf32>
    %cst_28 = arith.constant 0.333333343 : f32
    %93 = vector.broadcast %cst_28 : f32 to vector<4x16xf32>
    %94 = arith.mulf %92, %93 : vector<4x16xf32>
    %95 = vector.extract_strided_slice %7 {offsets = [0, 5, 0], sizes = [4, 1, 16], strides = [1, 1, 1]} : vector<4x8x16xf32> to vector<4x1x16xf32>
    %96 = vector.shape_cast %95 : vector<4x1x16xf32> to vector<4x16xf32>
    %cst_29 = arith.constant 0.666666686 : f32
    %97 = vector.broadcast %cst_29 : f32 to vector<4x16xf32>
    %98 = arith.mulf %96, %97 : vector<4x16xf32>
    %99 = arith.addf %94, %98 : vector<4x16xf32>
    %100 = vector.extract_strided_slice %7 {offsets = [0, 5, 0], sizes = [4, 1, 16], strides = [1, 1, 1]} : vector<4x8x16xf32> to vector<4x1x16xf32>
    %101 = vector.shape_cast %100 : vector<4x1x16xf32> to vector<4x16xf32>
    %cst_30 = arith.constant 0.866666674 : f32
    %102 = vector.broadcast %cst_30 : f32 to vector<4x16xf32>
    %103 = arith.mulf %101, %102 : vector<4x16xf32>
    %104 = vector.extract_strided_slice %7 {offsets = [0, 6, 0], sizes = [4, 1, 16], strides = [1, 1, 1]} : vector<4x8x16xf32> to vector<4x1x16xf32>
    %105 = vector.shape_cast %104 : vector<4x1x16xf32> to vector<4x16xf32>
    %cst_31 = arith.constant 0.13333334 : f32
    %106 = vector.broadcast %cst_31 : f32 to vector<4x16xf32>
    %107 = arith.mulf %105, %106 : vector<4x16xf32>
    %108 = arith.addf %103, %107 : vector<4x16xf32>
    %109 = vector.extract_strided_slice %7 {offsets = [0, 5, 0], sizes = [4, 1, 16], strides = [1, 1, 1]} : vector<4x8x16xf32> to vector<4x1x16xf32>
    %110 = vector.shape_cast %109 : vector<4x1x16xf32> to vector<4x16xf32>
    %cst_32 = arith.constant 4.000000e-01 : f32
    %111 = vector.broadcast %cst_32 : f32 to vector<4x16xf32>
    %112 = arith.mulf %110, %111 : vector<4x16xf32>
    %113 = vector.extract_strided_slice %7 {offsets = [0, 6, 0], sizes = [4, 1, 16], strides = [1, 1, 1]} : vector<4x8x16xf32> to vector<4x1x16xf32>
    %114 = vector.shape_cast %113 : vector<4x1x16xf32> to vector<4x16xf32>
    %cst_33 = arith.constant 6.000000e-01 : f32
    %115 = vector.broadcast %cst_33 : f32 to vector<4x16xf32>
    %116 = arith.mulf %114, %115 : vector<4x16xf32>
    %117 = arith.addf %112, %116 : vector<4x16xf32>
    %118 = vector.extract_strided_slice %7 {offsets = [0, 6, 0], sizes = [4, 1, 16], strides = [1, 1, 1]} : vector<4x8x16xf32> to vector<4x1x16xf32>
    %119 = vector.shape_cast %118 : vector<4x1x16xf32> to vector<4x16xf32>
    %cst_34 = arith.constant 0.933333337 : f32
    %120 = vector.broadcast %cst_34 : f32 to vector<4x16xf32>
    %121 = arith.mulf %119, %120 : vector<4x16xf32>
    %122 = vector.extract_strided_slice %7 {offsets = [0, 7, 0], sizes = [4, 1, 16], strides = [1, 1, 1]} : vector<4x8x16xf32> to vector<4x1x16xf32>
    %123 = vector.shape_cast %122 : vector<4x1x16xf32> to vector<4x16xf32>
    %cst_35 = arith.constant 0.0666666701 : f32
    %124 = vector.broadcast %cst_35 : f32 to vector<4x16xf32>
    %125 = arith.mulf %123, %124 : vector<4x16xf32>
    %126 = arith.addf %121, %125 : vector<4x16xf32>
    %127 = vector.extract_strided_slice %7 {offsets = [0, 6, 0], sizes = [4, 1, 16], strides = [1, 1, 1]} : vector<4x8x16xf32> to vector<4x1x16xf32>
    %128 = vector.shape_cast %127 : vector<4x1x16xf32> to vector<4x16xf32>
    %cst_36 = arith.constant 0.466666669 : f32
    %129 = vector.broadcast %cst_36 : f32 to vector<4x16xf32>
    %130 = arith.mulf %128, %129 : vector<4x16xf32>
    %131 = vector.extract_strided_slice %7 {offsets = [0, 7, 0], sizes = [4, 1, 16], strides = [1, 1, 1]} : vector<4x8x16xf32> to vector<4x1x16xf32>
    %132 = vector.shape_cast %131 : vector<4x1x16xf32> to vector<4x16xf32>
    %cst_37 = arith.constant 0.533333361 : f32
    %133 = vector.broadcast %cst_37 : f32 to vector<4x16xf32>
    %134 = arith.mulf %132, %133 : vector<4x16xf32>
    %135 = arith.addf %130, %134 : vector<4x16xf32>
    %136 = vector.extract_strided_slice %7 {offsets = [0, 7, 0], sizes = [4, 1, 16], strides = [1, 1, 1]} : vector<4x8x16xf32> to vector<4x1x16xf32>
    %137 = vector.shape_cast %136 : vector<4x1x16xf32> to vector<4x16xf32>
    %138 = tpu.concatenate %9, %18, %27, %36, %45, %54, %63, %72, %81, %90, %99, %108, %117, %126, %135, %137 in 1 : vector<4x16xf32>, vector<4x16xf32>, vector<4x16xf32>, vector<4x16xf32>, vector<4x16xf32>, vector<4x16xf32>, vector<4x16xf32>, vector<4x16xf32>, vector<4x16xf32>, vector<4x16xf32>, vector<4x16xf32>, vector<4x16xf32>, vector<4x16xf32>, vector<4x16xf32>, vector<4x16xf32>, vector<4x16xf32> -> vector<4x256xf32>
    %c0_38 = arith.constant 0 : index
    %c0_39 = arith.constant 0 : index
    %c0_40 = arith.constant 0 : index
    %139 = vector.load %arg2[%c0_38, %c0_39, %c0_40] : memref<1x4x256xf32, #tpu.memory_space<vmem>>, vector<1x4x256xf32>
    %140 = vector.shape_cast %139 : vector<1x4x256xf32> to vector<4x256xf32>
    %cst_41 = arith.constant 0.000000e+00 : f32
    %141 = vector.broadcast %cst_41 : f32 to vector<8x16xf32>
    %142 = tpu.concatenate %140, %138 in 0 : vector<4x256xf32>, vector<4x256xf32> -> vector<8x256xf32>
    %cst_42 = arith.constant 0.000000e+00 : f32
    %143 = vector.broadcast %cst_42 : f32 to vector<8x112xf32>
    %144 = tpu.concatenate %141, %142, %143 in 1 : vector<8x16xf32>, vector<8x256xf32>, vector<8x112xf32> -> vector<8x384xf32>
    %c0_43 = arith.constant 0 : index
    %c0_44 = arith.constant 0 : index
    %c0_45 = arith.constant 0 : index
    %145 = vector.load %arg4[%c0_43, %c0_44, %c0_45] : memref<9x4x8xf32, #tpu.memory_space<vmem>>, vector<9x4x8xf32>
    %cst_46 = arith.constant 0.000000e+00 : f32
    %146 = vector.broadcast %cst_46 : f32 to vector<4x384xf32>
    %c17_i32 = arith.constant 17 : i32
    %147 = tpu.dynamic_rotate %144 by %c17_i32 dim 1 : vector<8x384xf32>, i32 -> vector<8x384xf32>
    %148 = vector.broadcast %0 : vector<1x384xf32> to vector<8x384xf32>
    %149 = arith.mulf %147, %148 : vector<8x384xf32>
    %150 = vector.extract_strided_slice %145 {offsets = [0, 0, 0], sizes = [1, 4, 8], strides = [1, 1, 1]} : vector<9x4x8xf32> to vector<1x4x8xf32>
    %151 = vector.shape_cast %150 : vector<1x4x8xf32> to vector<4x8xf32>
    %cst_47 = arith.constant dense<0.000000e+00> : vector<4x384xf32>
    %152 = tpu.matmul %151, %149, %cst_47 {dimension_numbers = #tpu.dot_dimension_numbers<[1], [0], [0], [1], [0, 0, 1, 1], [], []>} : vector<4x8xf32>, vector<8x384xf32>, vector<4x384xf32> -> vector<4x384xf32>
    %153 = arith.addf %146, %152 : vector<4x384xf32>
    %c16_i32 = arith.constant 16 : i32
    %154 = tpu.dynamic_rotate %144 by %c16_i32 dim 1 : vector<8x384xf32>, i32 -> vector<8x384xf32>
    %155 = vector.extract_strided_slice %145 {offsets = [1, 0, 0], sizes = [1, 4, 8], strides = [1, 1, 1]} : vector<9x4x8xf32> to vector<1x4x8xf32>
    %156 = vector.shape_cast %155 : vector<1x4x8xf32> to vector<4x8xf32>
    %cst_48 = arith.constant dense<0.000000e+00> : vector<4x384xf32>
    %157 = tpu.matmul %156, %154, %cst_48 {dimension_numbers = #tpu.dot_dimension_numbers<[1], [0], [0], [1], [0, 0, 1, 1], [], []>} : vector<4x8xf32>, vector<8x384xf32>, vector<4x384xf32> -> vector<4x384xf32>
    %158 = arith.addf %153, %157 : vector<4x384xf32>
    %c15_i32 = arith.constant 15 : i32
    %159 = tpu.dynamic_rotate %144 by %c15_i32 dim 1 : vector<8x384xf32>, i32 -> vector<8x384xf32>
    %160 = vector.broadcast %1 : vector<1x384xf32> to vector<8x384xf32>
    %161 = arith.mulf %159, %160 : vector<8x384xf32>
    %162 = vector.extract_strided_slice %145 {offsets = [2, 0, 0], sizes = [1, 4, 8], strides = [1, 1, 1]} : vector<9x4x8xf32> to vector<1x4x8xf32>
    %163 = vector.shape_cast %162 : vector<1x4x8xf32> to vector<4x8xf32>
    %cst_49 = arith.constant dense<0.000000e+00> : vector<4x384xf32>
    %164 = tpu.matmul %163, %161, %cst_49 {dimension_numbers = #tpu.dot_dimension_numbers<[1], [0], [0], [1], [0, 0, 1, 1], [], []>} : vector<4x8xf32>, vector<8x384xf32>, vector<4x384xf32> -> vector<4x384xf32>
    %165 = arith.addf %158, %164 : vector<4x384xf32>
    %c1_i32 = arith.constant 1 : i32
    %166 = tpu.dynamic_rotate %144 by %c1_i32 dim 1 : vector<8x384xf32>, i32 -> vector<8x384xf32>
    %167 = vector.broadcast %0 : vector<1x384xf32> to vector<8x384xf32>
    %168 = arith.mulf %166, %167 : vector<8x384xf32>
    %169 = vector.extract_strided_slice %145 {offsets = [3, 0, 0], sizes = [1, 4, 8], strides = [1, 1, 1]} : vector<9x4x8xf32> to vector<1x4x8xf32>
    %170 = vector.shape_cast %169 : vector<1x4x8xf32> to vector<4x8xf32>
    %cst_50 = arith.constant dense<0.000000e+00> : vector<4x384xf32>
    %171 = tpu.matmul %170, %168, %cst_50 {dimension_numbers = #tpu.dot_dimension_numbers<[1], [0], [0], [1], [0, 0, 1, 1], [], []>} : vector<4x8xf32>, vector<8x384xf32>, vector<4x384xf32> -> vector<4x384xf32>
    %172 = arith.addf %165, %171 : vector<4x384xf32>
    %173 = vector.extract_strided_slice %145 {offsets = [4, 0, 0], sizes = [1, 4, 8], strides = [1, 1, 1]} : vector<9x4x8xf32> to vector<1x4x8xf32>
    %174 = vector.shape_cast %173 : vector<1x4x8xf32> to vector<4x8xf32>
    %cst_51 = arith.constant dense<0.000000e+00> : vector<4x384xf32>
    %175 = tpu.matmul %174, %144, %cst_51 {dimension_numbers = #tpu.dot_dimension_numbers<[1], [0], [0], [1], [0, 0, 1, 1], [], []>} : vector<4x8xf32>, vector<8x384xf32>, vector<4x384xf32> -> vector<4x384xf32>
    %176 = arith.addf %172, %175 : vector<4x384xf32>
    %c383_i32 = arith.constant 383 : i32
    %177 = tpu.dynamic_rotate %144 by %c383_i32 dim 1 : vector<8x384xf32>, i32 -> vector<8x384xf32>
    %178 = vector.broadcast %1 : vector<1x384xf32> to vector<8x384xf32>
    %179 = arith.mulf %177, %178 : vector<8x384xf32>
    %180 = vector.extract_strided_slice %145 {offsets = [5, 0, 0], sizes = [1, 4, 8], strides = [1, 1, 1]} : vector<9x4x8xf32> to vector<1x4x8xf32>
    %181 = vector.shape_cast %180 : vector<1x4x8xf32> to vector<4x8xf32>
    %cst_52 = arith.constant dense<0.000000e+00> : vector<4x384xf32>
    %182 = tpu.matmul %181, %179, %cst_52 {dimension_numbers = #tpu.dot_dimension_numbers<[1], [0], [0], [1], [0, 0, 1, 1], [], []>} : vector<4x8xf32>, vector<8x384xf32>, vector<4x384xf32> -> vector<4x384xf32>
    %183 = arith.addf %176, %182 : vector<4x384xf32>
    %c369_i32 = arith.constant 369 : i32
    %184 = tpu.dynamic_rotate %144 by %c369_i32 dim 1 : vector<8x384xf32>, i32 -> vector<8x384xf32>
    %185 = vector.broadcast %0 : vector<1x384xf32> to vector<8x384xf32>
    %186 = arith.mulf %184, %185 : vector<8x384xf32>
    %187 = vector.extract_strided_slice %145 {offsets = [6, 0, 0], sizes = [1, 4, 8], strides = [1, 1, 1]} : vector<9x4x8xf32> to vector<1x4x8xf32>
    %188 = vector.shape_cast %187 : vector<1x4x8xf32> to vector<4x8xf32>
    %cst_53 = arith.constant dense<0.000000e+00> : vector<4x384xf32>
    %189 = tpu.matmul %188, %186, %cst_53 {dimension_numbers = #tpu.dot_dimension_numbers<[1], [0], [0], [1], [0, 0, 1, 1], [], []>} : vector<4x8xf32>, vector<8x384xf32>, vector<4x384xf32> -> vector<4x384xf32>
    %190 = arith.addf %183, %189 : vector<4x384xf32>
    %c368_i32 = arith.constant 368 : i32
    %191 = tpu.dynamic_rotate %144 by %c368_i32 dim 1 : vector<8x384xf32>, i32 -> vector<8x384xf32>
    %192 = vector.extract_strided_slice %145 {offsets = [7, 0, 0], sizes = [1, 4, 8], strides = [1, 1, 1]} : vector<9x4x8xf32> to vector<1x4x8xf32>
    %193 = vector.shape_cast %192 : vector<1x4x8xf32> to vector<4x8xf32>
    %cst_54 = arith.constant dense<0.000000e+00> : vector<4x384xf32>
    %194 = tpu.matmul %193, %191, %cst_54 {dimension_numbers = #tpu.dot_dimension_numbers<[1], [0], [0], [1], [0, 0, 1, 1], [], []>} : vector<4x8xf32>, vector<8x384xf32>, vector<4x384xf32> -> vector<4x384xf32>
    %195 = arith.addf %190, %194 : vector<4x384xf32>
    %c367_i32 = arith.constant 367 : i32
    %196 = tpu.dynamic_rotate %144 by %c367_i32 dim 1 : vector<8x384xf32>, i32 -> vector<8x384xf32>
    %197 = vector.broadcast %1 : vector<1x384xf32> to vector<8x384xf32>
    %198 = arith.mulf %196, %197 : vector<8x384xf32>
    %199 = vector.extract_strided_slice %145 {offsets = [8, 0, 0], sizes = [1, 4, 8], strides = [1, 1, 1]} : vector<9x4x8xf32> to vector<1x4x8xf32>
    %200 = vector.shape_cast %199 : vector<1x4x8xf32> to vector<4x8xf32>
    %cst_55 = arith.constant dense<0.000000e+00> : vector<4x384xf32>
    %201 = tpu.matmul %200, %198, %cst_55 {dimension_numbers = #tpu.dot_dimension_numbers<[1], [0], [0], [1], [0, 0, 1, 1], [], []>} : vector<4x8xf32>, vector<8x384xf32>, vector<4x384xf32> -> vector<4x384xf32>
    %202 = arith.addf %195, %201 : vector<4x384xf32>
    %c0_56 = arith.constant 0 : index
    %c0_57 = arith.constant 0 : index
    %203 = vector.load %arg5[%c0_56, %c0_57] : memref<4x1xf32, #tpu.memory_space<vmem>>, vector<4x1xf32>
    %204 = vector.broadcast %203 : vector<4x1xf32> to vector<4x384xf32>
    %205 = arith.mulf %202, %204 : vector<4x384xf32>
    %c0_58 = arith.constant 0 : index
    %c0_59 = arith.constant 0 : index
    %206 = vector.load %arg6[%c0_58, %c0_59] : memref<4x1xf32, #tpu.memory_space<vmem>>, vector<4x1xf32>
    %207 = vector.broadcast %206 : vector<4x1xf32> to vector<4x384xf32>
    %208 = arith.addf %205, %207 : vector<4x384xf32>
    %cst_60 = arith.constant 0.000000e+00 : f32
    %209 = vector.broadcast %cst_60 : f32 to vector<4x384xf32>
    %210 = arith.maximumf %208, %209 : vector<4x384xf32>
    %211 = vector.broadcast %2 : vector<1x384xf32> to vector<4x384xf32>
    %212 = arith.mulf %210, %211 : vector<4x384xf32>
    %c0_61 = arith.constant 0 : index
    %c0_62 = arith.constant 0 : index
    %c0_63 = arith.constant 0 : index
    %213 = vector.load %arg7[%c0_61, %c0_62, %c0_63] : memref<9x4x4xf32, #tpu.memory_space<vmem>>, vector<9x4x4xf32>
    %cst_64 = arith.constant 0.000000e+00 : f32
    %214 = vector.broadcast %cst_64 : f32 to vector<4x384xf32>
    %c17_i32_65 = arith.constant 17 : i32
    %215 = tpu.dynamic_rotate %212 by %c17_i32_65 dim 1 : vector<4x384xf32>, i32 -> vector<4x384xf32>
    %216 = vector.broadcast %0 : vector<1x384xf32> to vector<4x384xf32>
    %217 = arith.mulf %215, %216 : vector<4x384xf32>
    %218 = vector.extract_strided_slice %213 {offsets = [0, 0, 0], sizes = [1, 4, 4], strides = [1, 1, 1]} : vector<9x4x4xf32> to vector<1x4x4xf32>
    %219 = vector.shape_cast %218 : vector<1x4x4xf32> to vector<4x4xf32>
    %cst_66 = arith.constant dense<0.000000e+00> : vector<4x384xf32>
    %220 = tpu.matmul %219, %217, %cst_66 {dimension_numbers = #tpu.dot_dimension_numbers<[1], [0], [0], [1], [0, 0, 1, 1], [], []>} : vector<4x4xf32>, vector<4x384xf32>, vector<4x384xf32> -> vector<4x384xf32>
    %221 = arith.addf %214, %220 : vector<4x384xf32>
    %c16_i32_67 = arith.constant 16 : i32
    %222 = tpu.dynamic_rotate %212 by %c16_i32_67 dim 1 : vector<4x384xf32>, i32 -> vector<4x384xf32>
    %223 = vector.extract_strided_slice %213 {offsets = [1, 0, 0], sizes = [1, 4, 4], strides = [1, 1, 1]} : vector<9x4x4xf32> to vector<1x4x4xf32>
    %224 = vector.shape_cast %223 : vector<1x4x4xf32> to vector<4x4xf32>
    %cst_68 = arith.constant dense<0.000000e+00> : vector<4x384xf32>
    %225 = tpu.matmul %224, %222, %cst_68 {dimension_numbers = #tpu.dot_dimension_numbers<[1], [0], [0], [1], [0, 0, 1, 1], [], []>} : vector<4x4xf32>, vector<4x384xf32>, vector<4x384xf32> -> vector<4x384xf32>
    %226 = arith.addf %221, %225 : vector<4x384xf32>
    %c15_i32_69 = arith.constant 15 : i32
    %227 = tpu.dynamic_rotate %212 by %c15_i32_69 dim 1 : vector<4x384xf32>, i32 -> vector<4x384xf32>
    %228 = vector.broadcast %1 : vector<1x384xf32> to vector<4x384xf32>
    %229 = arith.mulf %227, %228 : vector<4x384xf32>
    %230 = vector.extract_strided_slice %213 {offsets = [2, 0, 0], sizes = [1, 4, 4], strides = [1, 1, 1]} : vector<9x4x4xf32> to vector<1x4x4xf32>
    %231 = vector.shape_cast %230 : vector<1x4x4xf32> to vector<4x4xf32>
    %cst_70 = arith.constant dense<0.000000e+00> : vector<4x384xf32>
    %232 = tpu.matmul %231, %229, %cst_70 {dimension_numbers = #tpu.dot_dimension_numbers<[1], [0], [0], [1], [0, 0, 1, 1], [], []>} : vector<4x4xf32>, vector<4x384xf32>, vector<4x384xf32> -> vector<4x384xf32>
    %233 = arith.addf %226, %232 : vector<4x384xf32>
    %c1_i32_71 = arith.constant 1 : i32
    %234 = tpu.dynamic_rotate %212 by %c1_i32_71 dim 1 : vector<4x384xf32>, i32 -> vector<4x384xf32>
    %235 = vector.broadcast %0 : vector<1x384xf32> to vector<4x384xf32>
    %236 = arith.mulf %234, %235 : vector<4x384xf32>
    %237 = vector.extract_strided_slice %213 {offsets = [3, 0, 0], sizes = [1, 4, 4], strides = [1, 1, 1]} : vector<9x4x4xf32> to vector<1x4x4xf32>
    %238 = vector.shape_cast %237 : vector<1x4x4xf32> to vector<4x4xf32>
    %cst_72 = arith.constant dense<0.000000e+00> : vector<4x384xf32>
    %239 = tpu.matmul %238, %236, %cst_72 {dimension_numbers = #tpu.dot_dimension_numbers<[1], [0], [0], [1], [0, 0, 1, 1], [], []>} : vector<4x4xf32>, vector<4x384xf32>, vector<4x384xf32> -> vector<4x384xf32>
    %240 = arith.addf %233, %239 : vector<4x384xf32>
    %241 = vector.extract_strided_slice %213 {offsets = [4, 0, 0], sizes = [1, 4, 4], strides = [1, 1, 1]} : vector<9x4x4xf32> to vector<1x4x4xf32>
    %242 = vector.shape_cast %241 : vector<1x4x4xf32> to vector<4x4xf32>
    %cst_73 = arith.constant dense<0.000000e+00> : vector<4x384xf32>
    %243 = tpu.matmul %242, %212, %cst_73 {dimension_numbers = #tpu.dot_dimension_numbers<[1], [0], [0], [1], [0, 0, 1, 1], [], []>} : vector<4x4xf32>, vector<4x384xf32>, vector<4x384xf32> -> vector<4x384xf32>
    %244 = arith.addf %240, %243 : vector<4x384xf32>
    %c383_i32_74 = arith.constant 383 : i32
    %245 = tpu.dynamic_rotate %212 by %c383_i32_74 dim 1 : vector<4x384xf32>, i32 -> vector<4x384xf32>
    %246 = vector.broadcast %1 : vector<1x384xf32> to vector<4x384xf32>
    %247 = arith.mulf %245, %246 : vector<4x384xf32>
    %248 = vector.extract_strided_slice %213 {offsets = [5, 0, 0], sizes = [1, 4, 4], strides = [1, 1, 1]} : vector<9x4x4xf32> to vector<1x4x4xf32>
    %249 = vector.shape_cast %248 : vector<1x4x4xf32> to vector<4x4xf32>
    %cst_75 = arith.constant dense<0.000000e+00> : vector<4x384xf32>
    %250 = tpu.matmul %249, %247, %cst_75 {dimension_numbers = #tpu.dot_dimension_numbers<[1], [0], [0], [1], [0, 0, 1, 1], [], []>} : vector<4x4xf32>, vector<4x384xf32>, vector<4x384xf32> -> vector<4x384xf32>
    %251 = arith.addf %244, %250 : vector<4x384xf32>
    %c369_i32_76 = arith.constant 369 : i32
    %252 = tpu.dynamic_rotate %212 by %c369_i32_76 dim 1 : vector<4x384xf32>, i32 -> vector<4x384xf32>
    %253 = vector.broadcast %0 : vector<1x384xf32> to vector<4x384xf32>
    %254 = arith.mulf %252, %253 : vector<4x384xf32>
    %255 = vector.extract_strided_slice %213 {offsets = [6, 0, 0], sizes = [1, 4, 4], strides = [1, 1, 1]} : vector<9x4x4xf32> to vector<1x4x4xf32>
    %256 = vector.shape_cast %255 : vector<1x4x4xf32> to vector<4x4xf32>
    %cst_77 = arith.constant dense<0.000000e+00> : vector<4x384xf32>
    %257 = tpu.matmul %256, %254, %cst_77 {dimension_numbers = #tpu.dot_dimension_numbers<[1], [0], [0], [1], [0, 0, 1, 1], [], []>} : vector<4x4xf32>, vector<4x384xf32>, vector<4x384xf32> -> vector<4x384xf32>
    %258 = arith.addf %251, %257 : vector<4x384xf32>
    %c368_i32_78 = arith.constant 368 : i32
    %259 = tpu.dynamic_rotate %212 by %c368_i32_78 dim 1 : vector<4x384xf32>, i32 -> vector<4x384xf32>
    %260 = vector.extract_strided_slice %213 {offsets = [7, 0, 0], sizes = [1, 4, 4], strides = [1, 1, 1]} : vector<9x4x4xf32> to vector<1x4x4xf32>
    %261 = vector.shape_cast %260 : vector<1x4x4xf32> to vector<4x4xf32>
    %cst_79 = arith.constant dense<0.000000e+00> : vector<4x384xf32>
    %262 = tpu.matmul %261, %259, %cst_79 {dimension_numbers = #tpu.dot_dimension_numbers<[1], [0], [0], [1], [0, 0, 1, 1], [], []>} : vector<4x4xf32>, vector<4x384xf32>, vector<4x384xf32> -> vector<4x384xf32>
    %263 = arith.addf %258, %262 : vector<4x384xf32>
    %c367_i32_80 = arith.constant 367 : i32
    %264 = tpu.dynamic_rotate %212 by %c367_i32_80 dim 1 : vector<4x384xf32>, i32 -> vector<4x384xf32>
    %265 = vector.broadcast %1 : vector<1x384xf32> to vector<4x384xf32>
    %266 = arith.mulf %264, %265 : vector<4x384xf32>
    %267 = vector.extract_strided_slice %213 {offsets = [8, 0, 0], sizes = [1, 4, 4], strides = [1, 1, 1]} : vector<9x4x4xf32> to vector<1x4x4xf32>
    %268 = vector.shape_cast %267 : vector<1x4x4xf32> to vector<4x4xf32>
    %cst_81 = arith.constant dense<0.000000e+00> : vector<4x384xf32>
    %269 = tpu.matmul %268, %266, %cst_81 {dimension_numbers = #tpu.dot_dimension_numbers<[1], [0], [0], [1], [0, 0, 1, 1], [], []>} : vector<4x4xf32>, vector<4x384xf32>, vector<4x384xf32> -> vector<4x384xf32>
    %270 = arith.addf %263, %269 : vector<4x384xf32>
    %c0_82 = arith.constant 0 : index
    %c0_83 = arith.constant 0 : index
    %271 = vector.load %arg8[%c0_82, %c0_83] : memref<4x1xf32, #tpu.memory_space<vmem>>, vector<4x1xf32>
    %272 = vector.broadcast %271 : vector<4x1xf32> to vector<4x384xf32>
    %273 = arith.mulf %270, %272 : vector<4x384xf32>
    %c0_84 = arith.constant 0 : index
    %c0_85 = arith.constant 0 : index
    %274 = vector.load %arg9[%c0_84, %c0_85] : memref<4x1xf32, #tpu.memory_space<vmem>>, vector<4x1xf32>
    %275 = vector.broadcast %274 : vector<4x1xf32> to vector<4x384xf32>
    %276 = arith.addf %273, %275 : vector<4x384xf32>
    %cst_86 = arith.constant 0.000000e+00 : f32
    %277 = vector.broadcast %cst_86 : f32 to vector<4x384xf32>
    %278 = arith.maximumf %276, %277 : vector<4x384xf32>
    %279 = vector.extract_strided_slice %278 {offsets = [0, 16], sizes = [4, 256], strides = [1, 1]} : vector<4x384xf32> to vector<4x256xf32>
    %c0_87 = arith.constant 0 : index
    %c0_88 = arith.constant 0 : index
    %c0_89 = arith.constant 0 : index
    %280 = vector.load %arg13[%c0_87, %c0_88, %c0_89] : memref<1x4x256xf32, #tpu.memory_space<vmem>>, vector<1x4x256xf32>
    %281 = vector.shape_cast %280 : vector<1x4x256xf32> to vector<4x256xf32>
    %282 = vector.shape_cast %279 : vector<4x256xf32> to vector<1x4x256xf32>
    tpu.vector_store %arg13[%c0_87, %c0_88, %c0_89], %282 {strides = array<i32>} : memref<1x4x256xf32, #tpu.memory_space<vmem>>, vector<1x4x256xf32>,
    return
  }
  func.func @transform_0(%arg0: i32) -> (i32, i32, i32) {
    %c0_i32 = arith.constant 0 : i32
    %c0_i32_0 = arith.constant 0 : i32
    %c0_i32_1 = arith.constant 0 : i32
    return %arg0, %c0_i32, %c0_i32_0 : i32, i32, i32
  }
  func.func @transform_1(%arg0: i32) -> (i32, i32, i32) {
    %c0_i32 = arith.constant 0 : i32
    %c0_i32_0 = arith.constant 0 : i32
    %c0_i32_1 = arith.constant 0 : i32
    return %arg0, %c0_i32, %c0_i32_0 : i32, i32, i32
  }
  func.func @transform_2(%arg0: i32) -> (i32, i32) {
    %c0_i32 = arith.constant 0 : i32
    %c0_i32_0 = arith.constant 0 : i32
    %c0_i32_1 = arith.constant 0 : i32
    return %c0_i32, %c0_i32_0 : i32, i32
  }
  func.func @transform_3(%arg0: i32) -> (i32, i32, i32) {
    %c0_i32 = arith.constant 0 : i32
    %c0_i32_0 = arith.constant 0 : i32
    %c0_i32_1 = arith.constant 0 : i32
    %c0_i32_2 = arith.constant 0 : i32
    return %c0_i32, %c0_i32_0, %c0_i32_1 : i32, i32, i32
  }
  func.func @transform_4(%arg0: i32) -> (i32, i32) {
    %c0_i32 = arith.constant 0 : i32
    %c0_i32_0 = arith.constant 0 : i32
    %c0_i32_1 = arith.constant 0 : i32
    return %c0_i32, %c0_i32_0 : i32, i32
  }
  func.func @transform_5(%arg0: i32) -> (i32, i32) {
    %c0_i32 = arith.constant 0 : i32
    %c0_i32_0 = arith.constant 0 : i32
    %c0_i32_1 = arith.constant 0 : i32
    return %c0_i32, %c0_i32_0 : i32, i32
  }
  func.func @transform_6(%arg0: i32) -> (i32, i32, i32) {
    %c0_i32 = arith.constant 0 : i32
    %c0_i32_0 = arith.constant 0 : i32
    %c0_i32_1 = arith.constant 0 : i32
    %c0_i32_2 = arith.constant 0 : i32
    return %c0_i32, %c0_i32_0, %c0_i32_1 : i32, i32, i32
  }
  func.func @transform_7(%arg0: i32) -> (i32, i32) {
    %c0_i32 = arith.constant 0 : i32
    %c0_i32_0 = arith.constant 0 : i32
    %c0_i32_1 = arith.constant 0 : i32
    return %c0_i32, %c0_i32_0 : i32, i32
  }
  func.func @transform_8(%arg0: i32) -> (i32, i32) {
    %c0_i32 = arith.constant 0 : i32
    %c0_i32_0 = arith.constant 0 : i32
    %c0_i32_1 = arith.constant 0 : i32
    return %c0_i32, %c0_i32_0 : i32, i32
  }
  func.func @transform_9(%arg0: i32) -> (i32, i32) {
    %c0_i32 = arith.constant 0 : i32
    %c0_i32_0 = arith.constant 0 : i32
    %c0_i32_1 = arith.constant 0 : i32
    return %c0_i32, %c0_i32_0 : i32, i32
  }
  func.func @transform_10(%arg0: i32) -> (i32, i32) {
    %c0_i32 = arith.constant 0 : i32
    %c0_i32_0 = arith.constant 0 : i32
    %c0_i32_1 = arith.constant 0 : i32
    return %c0_i32, %c0_i32_0 : i32, i32
  }
  func.func @transform_11(%arg0: i32) -> (i32, i32) {
    %c0_i32 = arith.constant 0 : i32
    %c0_i32_0 = arith.constant 0 : i32
    %c0_i32_1 = arith.constant 0 : i32
    return %c0_i32, %c0_i32_0 : i32, i32
  }
  func.func @transform_12(%arg0: i32) -> (i32, i32, i32) {
    %c0_i32 = arith.constant 0 : i32
    %c0_i32_0 = arith.constant 0 : i32
    %c0_i32_1 = arith.constant 0 : i32
    return %arg0, %c0_i32, %c0_i32_0 : i32, i32, i32
  }
}

</mosaic_0001>

<bundles_post_ra>
// kernel: up_forward.1
= control target key start
LH: loop header
LB: loop body
LE: loop exit
PB: predicated region body
PF: predicated region fallthrough
CT: control target
= control target key end

     0   :  { %s4581_s21 = smov 0   ;;  %s5412_s0 = inlined_call_operand.vmem [shape: f32[2,32,8], index: 0, kind: input, shape index: {}]   ;;  %s5413_s1 = inlined_call_operand.vmem [shape: f32[2,4,256], index: 1, kind: input, shape index: {}]   ;;  %s5414_s2 = inlined_call_operand.vmem [shape: f32[8,16], index: 2, kind: input, shape index: {}]   ;;  %s5415_s3 = inlined_call_operand.vmem [shape: f32[9,4,8], index: 3, kind: input, shape index: {}]   ;;  %s5416_s4 = inlined_call_operand.vmem [shape: f32[4,1], index: 4, kind: input, shape index: {}]   ;;  %s5417_s5 = inlined_call_operand.vmem [shape: f32[4,1], index: 5, kind: input, shape index: {}]   ;;  %s5418_s6 = inlined_call_operand.vmem [shape: f32[9,4,4], index: 6, kind: input, shape index: {}]   ;;  %s5419_s7 = inlined_call_operand.vmem [shape: f32[4,1], index: 7, kind: input, shape index: {}]   ;;  %s5420_s8 = inlined_call_operand.vmem [shape: f32[4,1], index: 8, kind: input, shape index: {}]   ;;  %s5421_s9 = inlined_call_operand.vmem [shape: f32[1,384], index: 9, kind: input, shape index: {}]   ;;  %s5422_s10 = inlined_call_operand.vmem [shape: f32[1,384], index: 10, kind: input, shape index: {}]   ;;  %s5423_s11 = inlined_call_operand.vmem [shape: f32[1,384], index: 11, kind: input, shape index: {}]   ;;  %s5424_s12 = inlined_call_operand.vmem [shape: f32[2,4,256], index: 12, kind: output, shape index: {}]  }
   0x1 LB: > { %s4174_s22 = sadd.s32 4294967295, %s4498_s21   ;;  %p4178_p0 = scmp.ge.s32.totalorder %s4498_s21, 1  ;;  %s4498_s21 = sphi %s4581_s21, %s22_s21  }
   0x2   : > { %p372_p1 = scmp.lt.s32.totalorder %s4498_s21, 3 }
   0x4   : > { %p373_p2 = pnand %p4178_p0, %p372_p1 }
   0x6   : > { %376 = sbr.rel (%p373_p2) target bundleno = 1470 (0x5be), region = 68 }
   0xd   : > { %v441_v0 = vld [vmem:[%s5414_s2] sm:$0xff]  ;;  %p419_p3 = scmp.lt.s32.totalorder %s4174_s22, 1  ;;  %vm442_vm0 = vcmask 64512   ;;  %vm825_vm1 = vcmask 1041409   ;;  %vm828_vm2 = vcmask 1042434   ;;  %vm831_vm3 = vcmask 1043459  }
   0xe   : > { %4301 = vmatprep.subr.mxu0 %v441_v0  ;;  %4399 = vmatprep.subr.mxu1 %v441_v0  ;;  %s4500_s29 = smov 32   ;;  %s4501_s30 = smov 16   ;;  %vm1030_vm4 = vcmask 130048   ;;  %vm1034_vm5 = vcmask 392192   ;;  %vm1032_vm6 = vcmask 261120   ;;  %vm1036_vm7 = vcmask 523264  }
   0xf   : > { %4302 = vmatpush3.msra.mxu0 %v441_v0  ;;  %4400 = vmatpush3.msra.mxu1 %v441_v0  ;;  %s5470_s22 = smov (!%p419_p3, %s4174_s22), 1  ;;  %s4502_s13 = smov 48   ;;  %vm1038_vm8 = vcmask 654336   ;;  %vm1040_vm9 = vcmask 785408   ;;  %vm1042_vm10 = vcmask 916480   ;;  %vm1061_vm11 = vcmask 1043456  }
  0x10   : > { %s4257_s25 = sshll.u32 %s5470_s22, 5  ;;  %s4503_s14 = smov 64   ;;  %vm4515_vm14 = vmmov 0  }
  0x11   : > { %s423_s28 = scalar_lea.vmem %s5412_s0, %s4257_s25  ;;  %s4504_s15 = smov 80  }
  0x12   : > { %v437_v1 = vld [vmem:[%s423_s28] sm:$0xff]  ;;  %v439_v2 = vld [vmem:[%s423_s28 + $0x10] sm:$0xff]  ;;  %v438_v3 = vld [vmem:[%s423_s28 + $0x8] sm:$0xff]  ;;  %s4505_s16 = smov 96   ;;  %s4506_s17 = smov 112  }
  0x13   : > { %4303 = vmatprep.mubr.msk.f32.mxu0 %vm442_vm0, %v437_v1  ;;  %4306 = vmatprep.mubr.msk.f32.mxu1 %vm442_vm0, %v439_v2  ;;  %v440_v4 = vld [vmem:[%s423_s28 + $0x18] sm:$0xff]  ;;  %s4258_s18 = sshll.u32 %s5470_s22, 3  ;;  %s4508_s24 = smov 17  }
  0x14   : > { %4304 = vmatmul.mubr.msk.f32.vlgmr.msra.gmra.mrb[0].mxu0 %vm442_vm0, %v438_v3  ;;  %4307 = vmatmul.mubr.msk.f32.vlgmr.msra.gmra.mrb[0].mxu1 %vm442_vm0, %v440_v4  ;;  %s428_s23 = scalar_lea.vmem %s5413_s1, %s4258_s18  ;;  %s4509_s25 = smov 15  }
  0x15   : > { %s4510_s26 = smov 1   ;;  %s4511_s27 = smov 127  }
  0x16   : > { %s4512_s28 = smov 113  }
  0xe7   : > { %v4602_v5 = vpop.f32.mrb[0].mxu0  ;;  %v4604_v6 = vpop.f32.mrb[0].mxu1 }
  0xe8   : > { %5442 = vst [vmem:[#allocation2_spill] sm:$0xff] %v4602_v5  ;;  %5443 = vst [vmem:[#allocation3_spill] sm:$0xff] %v4604_v6  ;;  %v4606_v7 = vpop.f32.mrb[1].mxu0  ;;  %v4608_v8 = vpop.f32.mrb[1].mxu1  ;;  %v4611_v9 = vmul.f32 0.06666667, %v4602_v5 }
  0xe9   : > { %5444 = vst [vmem:[#allocation4_spill] sm:$0xff] %v4606_v7  ;;  %5445 = vst [vmem:[#allocation5_spill] sm:$0xff] %v4608_v8  ;;  %v4614_v10 = vmul.f32 0.06666667, %v4604_v6  ;;  %v4617_v11 = vmul.f32 0.06666667, %v4606_v7 }
  0xea   : > { %v4620_v12 = vmul.f32 0.06666667, %v4608_v8  ;;  %v4623_v13 = vmul.f32 0.93333334, %v4606_v7  ;;  %v4626_v14 = vmul.f32 0.93333334, %v4602_v5 }
  0xeb   : > { %v4629_v15 = vmul.f32 0.93333334, %v4608_v8  ;;  %v4632_v16 = vmul.f32 0.93333334, %v4604_v6  ;;  %v4636_v18 = vmul.f32 0.53333336, %v4606_v7 }
  0xec   : > { %v576_v17 = vrot.slane %v4623_v13, 1  ;;  %v4639_v19 = vmul.f32 0.53333336, %v4602_v5  ;;  %v577_v21 = vrot.slane %v4626_v14, 1  ;;  %v4646_v24 = vmul.f32 0.53333336, %v4608_v8 }
  0xed   : > { %v578_v22 = vrot.slane %v4629_v15, 1  ;;  %v579_v23 = vrot.slane %v4632_v16, 1  ;;  %v4650_v26 = vmul.f32 0.53333336, %v4604_v6  ;;  %v4653_v27 = vmul.f32 0.46666667, %v4606_v7 }
  0xee   : > { %v584_v25 = vadd.f32 %v576_v17, %v4617_v11  ;;  %v4656_v28 = vmul.f32 0.46666667, %v4602_v5  ;;  %v585_v29 = vadd.f32 %v577_v21, %v4611_v9  ;;  %v4662_v32 = vmul.f32 0.46666667, %v4608_v8 }
  0xef   : > { %v586_v30 = vadd.f32 %v578_v22, %v4620_v12  ;;  %v587_v31 = vadd.f32 %v579_v23, %v4614_v10  ;;  %v4665_v33 = vmul.f32 0.46666667, %v4604_v6  ;;  %v552_v34 = vrot.slane %v4653_v27, 1 }
  0xf0   : > { %v553_v35 = vrot.slane %v4656_v28, 1  ;;  %v4670_v36 = vmul.f32 0.6666667, %v4606_v7  ;;  %v851_v37 = vrot.slane %v585_v29, 7  ;;  %v554_v40 = vrot.slane %v4662_v32, 1 }
  0xf1   : > { %5446 = vst [vmem:[#allocation6_spill] sm:$0xff] %v4665_v33  ;;  %v853_v38 = vrot.slane %v586_v30, 6  ;;  %v855_v39 = vrot.slane %v587_v31, 5  ;;  %v555_v41 = vrot.slane %v4665_v33, 1  ;;  %v560_v42 = vadd.f32 %v552_v34, %v4636_v18 }
  0xf2   : > { %v561_v43 = vadd.f32 %v553_v35, %v4639_v19  ;;  %v4677_v44 = vmul.f32 0.6666667, %v4602_v5  ;;  %v852_v45 = vsel %vm825_vm1, %v851_v37, %v584_v25  ;;  %v562_v46 = vadd.f32 %v554_v40, %v4646_v24 }
  0xf3   : > { %v4682_v47 = vmul.f32 0.6666667, %v4608_v8  ;;  %v4685_v48 = vmul.f32 0.6666667, %v4604_v6  ;;  %v854_v49 = vsel %vm828_vm2, %v853_v38, %v852_v45  ;;  %v563_v50 = vadd.f32 %v555_v41, %v4650_v26 }
  0xf4   : > { %v838_v51 = vrot.slane %v561_v43, 7  ;;  %v4690_v52 = vmul.f32 0.33333334, %v4606_v7  ;;  %v856_v53 = vsel %vm831_vm3, %v855_v39, %v854_v49  ;;  %v840_v54 = vrot.slane %v562_v46, 6 }
  0xf5   : > { %v4694_v55 = vmul.f32 0.33333334, %v4602_v5  ;;  %v4697_v56 = vmul.f32 0.33333334, %v4608_v8  ;;  %857 = vrot.lane.b32.xlu1 %v856_v53, %s4500_s29  ;;  %v842_v58 = vrot.slane %v563_v50, 5  ;;  %v744_v60 = vrot.slane %v4670_v36, 1 }
  0xf6   : > { %v839_v57 = vsel %vm825_vm1, %v838_v51, %v560_v42  ;;  %v4702_v59 = vmul.f32 0.33333334, %v4604_v6  ;;  %v745_v62 = vrot.slane %v4677_v44, 1  ;;  %v746_v63 = vrot.slane %v4682_v47, 1 }
  0xf7   : > { %v841_v61 = vsel %vm828_vm2, %v840_v54, %v839_v57  ;;  %v747_v0 = vrot.slane %v4685_v48, 1  ;;  %v752_v2 = vadd.f32 %v744_v60, %v4690_v52  ;;  %v4712_v3 = vmul.f32 0.2, %v4606_v7 }
  0xf8   : > { %v843_v1 = vsel %vm831_vm3, %v842_v58, %v841_v61  ;;  %v4715_v4 = vmul.f32 0.2, %v4602_v5  ;;  %v753_v17 = vadd.f32 %v745_v62, %v4694_v55  ;;  %v754_v21 = vadd.f32 %v746_v63, %v4697_v56 }
  0xf9   : > { %5447 = vst [vmem:[#allocation7_spill] sm:$0xff] %v4712_v3  ;;  %844 = vrot.lane.b32.xlu0 %v843_v1, %s4501_s30  ;;  %v755_v22 = vadd.f32 %v747_v0, %v4702_v59  ;;  %v4722_v23 = vmul.f32 0.2, %v4608_v8  ;;  %v954_v25 = vrot.slane %v752_v2, 4  ;;  %v4725_v29 = vmul.f32 0.2, %v4604_v6 }
  0xfa   : > { %5448 = vst [vmem:[#allocation8_spill] sm:$0xff] %v4715_v4  ;;  %v4728_v30 = vmul.f32 0.8, %v4606_v7  ;;  %v728_v31 = vrot.slane %v4712_v3, 1  ;;  %v955_v34 = vrot.slane %v753_v17, 3  ;;  %v957_v35 = vrot.slane %v754_v21, 2 }
  0xfb   : > { %5449 = vst [vmem:[#allocation9_spill] sm:$0xff] %v4722_v23  ;;  %5450 = vst [vmem:[#allocation10_spill] sm:$0xff] %v4725_v29  ;;  %v959_v37 = vrot.slane %v755_v22, 1  ;;  %v4732_v38 = vmul.f32 0.8, %v4602_v5  ;;  %v729_v41 = vrot.slane %v4715_v4, 1 }
  0xfc   : > { %5451 = vst [vmem:[#allocation11_spill] sm:$0xff] %v4728_v30  ;;  %v4735_v39 = vmul.f32 0.8, %v4608_v8  ;;  %v4738_v40 = vmul.f32 0.8, %v4604_v6  ;;  %v730_v42 = vrot.slane %v4722_v23, 1  ;;  %v956_v43 = vsel %vm825_vm1, %v955_v34, %v954_v25 }
  0xfd   : > { %5452 = vst [vmem:[#allocation12_spill] sm:$0xff] %v4732_v38  ;;  %v731_v45 = vrot.slane %v4725_v29, 1  ;;  %v736_v46 = vadd.f32 %v728_v31, %v4728_v30  ;;  %v4746_v49 = vmul.f32 0.13333334, %v4606_v7  ;;  %v958_v50 = vsel %vm828_vm2, %v957_v35, %v956_v43 }
  0xfe   : > { %5453 = vst [vmem:[#allocation13_spill] sm:$0xff] %v4735_v39  ;;  %5454 = vst [vmem:[#allocation14_spill] sm:$0xff] %v4738_v40  ;;  %v737_v51 = vadd.f32 %v729_v41, %v4732_v38  ;;  %v738_v53 = vadd.f32 %v730_v42, %v4735_v39  ;;  %v4752_v54 = vmul.f32 0.13333334, %v4602_v5  ;;  %v960_v57 = vsel %vm831_vm3, %v959_v37, %v958_v50 }
  0xff   : > { %v739_v58 = vadd.f32 %v731_v45, %v4738_v40  ;;  %v940_v60 = vrot.slane %v736_v46, 4  ;;  %v4757_v61 = vmul.f32 0.13333334, %v4608_v8  ;;  %961 = vrot.lane.b32.xlu1 %v960_v57, %s4500_s29  ;;  %v4761_v0 = vmul.f32 0.13333334, %v4604_v6  ;;  %s4513_s29 = smov 111  }
 0x100   : > { %v941_v62 = vrot.slane %v737_v51, 3  ;;  %v943_v63 = vrot.slane %v738_v53, 2  ;;  %v4764_v1 = vmul.f32 0.8666667, %v4606_v7  ;;  %v4767_v17 = vmul.f32 0.8666667, %v4602_v5 }
 0x101   : > { %v945_v2 = vrot.slane %v739_v58, 1  ;;  %v4770_v21 = vmul.f32 0.8666667, %v4608_v8  ;;  %v760_v22 = vrot.slane %v4746_v49, 1  ;;  %v4775_v31 = vmul.f32 0.8666667, %v4604_v6 }
 0x102   : > { %v942_v25 = vsel %vm825_vm1, %v941_v62, %v940_v60  ;;  %v761_v34 = vrot.slane %v4752_v54, 1  ;;  %v762_v35 = vrot.slane %v4757_v61, 1  ;;  %v763_v41 = vrot.slane %v4761_v0, 1 }
 0x103   : > { %v944_v37 = vsel %vm828_vm2, %v943_v63, %v942_v25  ;;  %v768_v42 = vadd.f32 %v760_v22, %v4764_v1  ;;  %v588_v43 = vmul.f32 0.6, %v4606_v7  ;;  %v589_v51 = vmul.f32 0.6, %v4602_v5 }
 0x104   : > { %v946_v45 = vsel %vm831_vm3, %v945_v2, %v944_v37  ;;  %v769_v46 = vadd.f32 %v761_v34, %v4767_v17  ;;  %v770_v50 = vadd.f32 %v762_v35, %v4770_v21  ;;  %v771_v53 = vadd.f32 %v763_v41, %v4775_v31 }
 0x105   : > { %947 = vrot.lane.b32.xlu0 %v946_v45, %s4501_s30  ;;  %v968_v57 = vrot.slane %v768_v42, 5  ;;  %v590_v58 = vmul.f32 0.6, %v4608_v8  ;;  %v591_v60 = vmul.f32 0.6, %v4604_v6  ;;  %v776_v37 = vrot.slane %v588_v43, 1 }
 0x106   : > { %v969_v62 = vrot.slane %v769_v46, 4  ;;  %v971_v63 = vrot.slane %v770_v50, 3  ;;  %v592_v22 = vmul.f32 0.4, %v4606_v7  ;;  %v593_v2 = vmul.f32 0.4, %v4602_v5 }
 0x107   : > { %v973_v25 = vrot.slane %v771_v53, 2  ;;  %v594_v34 = vmul.f32 0.4, %v4608_v8  ;;  %v595_v35 = vmul.f32 0.4, %v4604_v6  ;;  %v777_v20 = vrot.slane %v589_v51, 1 }
 0x108   : > { %v970_v45 = vsel %vm825_vm1, %v969_v62, %v968_v57  ;;  %v600_v41 = vrot.slane %v592_v22, 1  ;;  %v601_v42 = vrot.slane %v593_v2, 1  ;;  %v778_v50 = vrot.slane %v590_v58, 1 }
 0x109   : > { %v972_v29 = vsel %vm828_vm2, %v971_v63, %v970_v45  ;;  %v602_v23 = vrot.slane %v594_v34, 1  ;;  %v603_v46 = vrot.slane %v595_v35, 1  ;;  %v779_v53 = vrot.slane %v591_v60, 1 }
 0x10a   : > { %v974_v7 = vsel %vm831_vm3, %v973_v25, %v972_v29  ;;  %v608_v4 = vadd.f32 %v600_v41, %v588_v43  ;;  %v609_v5 = vadd.f32 %v601_v42, %v589_v51  ;;  %v784_v3 = vadd.f32 %v776_v37, %v592_v22 }
 0x10b   : > { %975 = vrot.lane.b32.xlu1 %v974_v7, %s4502_s13  ;;  %v610_v8 = vadd.f32 %v602_v23, %v590_v58  ;;  %v611_v6 = vadd.f32 %v603_v46, %v591_v60  ;;  %v785_v40 = vadd.f32 %v777_v20, %v593_v2  ;;  %v786_v62 = vadd.f32 %v778_v50, %v594_v34 }
 0x10c   : > { %v864_v57 = vrot.slane %v608_v4, 1  ;;  %v787_v39 = vadd.f32 %v779_v53, %v595_v35  ;;  %v624_v33 = vrot.slane %v4764_v1, 1  ;;  %v982_v38 = vrot.slane %v784_v3, 5 }
 0x10d   : > { %v866_v63 = vrot.slane %v610_v8, 7  ;;  %v868_v45 = vrot.slane %v611_v6, 6  ;;  %v983_v30 = vrot.slane %v785_v40, 4  ;;  %v985_v43 = vrot.slane %v786_v62, 3 }
 0x10e   : > { %v865_v29 = vsel %vm825_vm1, %v609_v5, %v864_v57  ;;  %v987_v51 = vrot.slane %v787_v39, 2  ;;  %v625_v25 = vrot.slane %v4767_v17, 1  ;;  %v626_v20 = vrot.slane %v4770_v21, 1 }
 0x10f   : > { %v867_v7 = vsel %vm828_vm2, %v866_v63, %v865_v29  ;;  %v984_v23 = vsel %vm825_vm1, %v983_v30, %v982_v38  ;;  %v627_v4 = vrot.slane %v4775_v31, 1  ;;  %v632_v8 = vadd.f32 %v624_v33, %v4746_v49  ;;  %v5457_v63 = vld [vmem:[#allocation12_spill] sm:$0xff] }
 0x110   : > { %v869_v1 = vsel %vm831_vm3, %v868_v45, %v867_v7  ;;  %v986_v6 = vsel %vm828_vm2, %v985_v43, %v984_v23  ;;  %v633_v5 = vadd.f32 %v625_v25, %v4752_v54  ;;  %v634_v39 = vadd.f32 %v626_v20, %v4757_v61 }
 0x111   : > { %870 = vrot.lane.b32.xlu0 %v869_v1, %s4502_s13  ;;  %v988_v3 = vsel %vm831_vm3, %v987_v51, %v986_v6  ;;  %v635_v40 = vadd.f32 %v627_v4, %v4761_v0  ;;  %v793_v30 = vrot.slane %v4611_v9, 1  ;;  %v877_v38 = vrot.slane %v632_v8, 1  ;;  %v5461_v1 = vld [vmem:[#allocation7_spill] sm:$0xff]  ;;  %v5462_v8 = vld [vmem:[#allocation8_spill] sm:$0xff] }
 0x112   : > { %989 = vrot.lane.b32.xlu1 %v988_v3, %s4503_s14  ;;  %v794_v17 = vrot.slane %v4620_v12, 1  ;;  %v795_v21 = vrot.slane %v4614_v10, 1  ;;  %v5455_v33 = vrot.slane %v4617_v11, 1  ;;  %v879_v54 = vrot.slane %v634_v39, 7  ;;  %v5463_v39 = vld [vmem:[#allocation9_spill] sm:$0xff] }
 0x113   : > { %v881_v31 = vrot.slane %v635_v40, 6  ;;  %v801_v58 = vadd.f32 %v793_v30, %v4626_v14  ;;  %v648_v61 = vrot.slane %v4690_v52, 1  ;;  %v878_v0 = vsel %vm825_vm1, %v633_v5, %v877_v38  ;;  %v5464_v30 = vld [vmem:[#allocation10_spill] sm:$0xff] }
 0x114   : > { %v800_v49 = vadd.f32 %v5455_v33, %v4623_v13  ;;  %v802_v9 = vadd.f32 %v794_v17, %v4629_v15  ;;  %v803_v60 = vadd.f32 %v795_v21, %v4632_v16  ;;  %v880_v12 = vsel %vm828_vm2, %v879_v54, %v878_v0  ;;  %v5465_v17 = vld [vmem:[#allocation4_spill] sm:$0xff]  ;;  %v5467_v0 = vld [vmem:[#allocation5_spill] sm:$0xff] }
 0x115   : > { %v997_v10 = vrot.slane %v801_v58, 5  ;;  %v649_v2 = vrot.slane %v4694_v55, 1  ;;  %v650_v11 = vrot.slane %v4697_v56, 1  ;;  %v882_v13 = vsel %vm831_vm3, %v881_v31, %v880_v12  ;;  %v5466_v31 = vld [vmem:[#allocation2_spill] sm:$0xff] }
 0x116   : > { %v996_v22 = vrot.slane %v800_v49, 6  ;;  %v999_v34 = vrot.slane %v802_v9, 4  ;;  %v1001_v14 = vrot.slane %v803_v60, 3  ;;  %v651_v52 = vrot.slane %v4702_v59, 1  ;;  %883 = vrot.lane.b32.xlu0 %v882_v13, %s4503_s14  ;;  %v5468_v60 = vld [vmem:[#allocation3_spill] sm:$0xff] }
 0x117   : > { %v656_v15 = vadd.f32 %v648_v61, %v4670_v36  ;;  %v657_v16 = vadd.f32 %v649_v2, %v4677_v44  ;;  %v658_v37 = vadd.f32 %v650_v11, %v4682_v47  ;;  %v808_v56 = vrot.slane %v4636_v18, 1 }
 0x118   : > { %v998_v35 = vsel %vm825_vm1, %v997_v10, %v996_v22  ;;  %v659_v55 = vadd.f32 %v651_v52, %v4685_v48  ;;  %v809_v42 = vrot.slane %v4639_v19, 1  ;;  %v810_v53 = vrot.slane %v4646_v24, 1  ;;  %v5456_v19 = vld [vmem:[#allocation11_spill] sm:$0xff]  ;;  %v5458_v24 = vld [vmem:[#allocation6_spill] sm:$0xff] }
 0x119   : > { %v1000_v41 = vsel %vm828_vm2, %v999_v34, %v998_v35  ;;  %v890_v59 = vrot.slane %v656_v15, 2  ;;  %v891_v50 = vrot.slane %v657_v16, 1  ;;  %v811_v44 = vrot.slane %v4650_v26, 1 }
 0x11a   : > { %v1002_v46 = vsel %vm831_vm3, %v1001_v14, %v1000_v41  ;;  %v894_v36 = vrot.slane %v659_v55, 7  ;;  %v816_v47 = vadd.f32 %v808_v56, %v4653_v27  ;;  %v817_v57 = vadd.f32 %v809_v42, %v4656_v28  ;;  %v5459_v27 = vld [vmem:[#allocation13_spill] sm:$0xff]  ;;  %v5460_v28 = vld [vmem:[#allocation14_spill] sm:$0xff] }
 0x11b   : > { %1003 = vrot.lane.b32.xlu1 %v1002_v46, %s4504_s15  ;;  %v892_v48 = vsel %vm825_vm1, %v891_v50, %v890_v59  ;;  %v818_v18 = vadd.f32 %v810_v53, %v4662_v32  ;;  %v672_v62 = vrot.slane %v5456_v19, 1  ;;  %v673_v45 = vrot.slane %v5457_v63, 1 }
 0x11c   : > { %v893_v29 = vsel %vm828_vm2, %v658_v37, %v892_v48  ;;  %v819_v43 = vadd.f32 %v811_v44, %v5458_v24  ;;  %v1010_v51 = vrot.slane %v816_v47, 6  ;;  %v1011_v25 = vrot.slane %v817_v57, 5 }
 0x11d   : > { %v895_v26 = vsel %vm831_vm3, %v894_v36, %v893_v29  ;;  %v1013_v7 = vrot.slane %v818_v18, 4  ;;  %v674_v23 = vrot.slane %v5459_v27, 1  ;;  %v675_v20 = vrot.slane %v5460_v28, 1 }
 0x11e   : > { %896 = vrot.lane.b32.xlu0 %v895_v26, %s4504_s15  ;;  %v1012_v32 = vsel %vm825_vm1, %v1011_v25, %v1010_v51  ;;  %v1015_v4 = vrot.slane %v819_v43, 3  ;;  %v680_v6 = vadd.f32 %v672_v62, %v5461_v1  ;;  %v681_v5 = vadd.f32 %v673_v45, %v5462_v8 }
 0x11f   : > { %v1014_v3 = vsel %vm828_vm2, %v1013_v7, %v1012_v32  ;;  %v682_v40 = vadd.f32 %v674_v23, %v5463_v39  ;;  %v683_v38 = vadd.f32 %v675_v20, %v5464_v30  ;;  %v1020_v21 = vrot.slane %v5465_v17, 7 }
 0x120   : > { %v1016_v33 = vsel %vm831_vm3, %v1015_v4, %v1014_v3  ;;  %v903_v49 = vrot.slane %v680_v6, 2  ;;  %v904_v54 = vrot.slane %v681_v5, 1  ;;  %v1021_v58 = vrot.slane %v5466_v31, 6 }
 0x121   : > { %1017 = vrot.lane.b32.xlu1 %v1016_v33, %s4505_s16  ;;  %v907_v61 = vrot.slane %v683_v38, 7  ;;  %v1023_v9 = vrot.slane %v5467_v0, 5  ;;  %v1025_v22 = vrot.slane %v5468_v60, 4  ;;  %v684_v12 = vmul.f32 0.73333335, %v5465_v17 }
 0x122   : > { %v905_v10 = vsel %vm825_vm1, %v904_v54, %v903_v49  ;;  %v1022_v2 = vsel %vm825_vm1, %v1021_v58, %v1020_v21  ;;  %v685_v11 = vmul.f32 0.73333335, %v5466_v31  ;;  %v686_v13 = vmul.f32 0.73333335, %v5467_v0 }
 0x123   : > { %v906_v34 = vsel %vm828_vm2, %v682_v40, %v905_v10  ;;  %v1024_v14 = vsel %vm828_vm2, %v1023_v9, %v1022_v2  ;;  %v687_v52 = vmul.f32 0.73333335, %v5468_v60  ;;  %v688_v35 = vmul.f32 0.26666668, %v5465_v17  ;;  %v1051_v9 = vld [vmem:[%s428_s23] sm:$0xff] }
 0x124   : > { %v908_v15 = vsel %vm831_vm3, %v907_v61, %v906_v34  ;;  %v1026_v16 = vsel %vm831_vm3, %v1025_v22, %v1024_v14  ;;  %v689_v37 = vmul.f32 0.26666668, %v5466_v31  ;;  %v690_v41 = vmul.f32 0.26666668, %v5467_v0 }
 0x125   : > { %909 = vrot.lane.b32.xlu0 %v908_v15, %s4505_s16  ;;  %1027 = vrot.lane.b32.xlu1 %v1026_v16, %s4506_s17  ;;  %v691_v55 = vmul.f32 0.26666668, %v5468_v60  ;;  %v696_v56 = vrot.slane %v688_v35, 1  ;;  %v712_v42 = vrot.slane %v684_v12, 1  ;;  %v713_v46 = vrot.slane %v685_v11, 1  ;;  %s433_s16 = scalar_lea.vmem %s5424_s12, %s4258_s18 }
 0x126   : > { %v697_v59 = vrot.slane %v689_v37, 1  ;;  %v698_v50 = vrot.slane %v690_v41, 1  ;;  %v714_v53 = vrot.slane %v686_v13, 1  ;;  %v715_v44 = vrot.slane %v687_v52, 1 }
 0x127   : > { %v704_v36 = vadd.f32 %v696_v56, %v684_v12  ;;  %v824_v47 = vrot.slane %v5466_v31, 7  ;;  %v827_v57 = vrot.slane %v5467_v0, 6  ;;  %v699_v48 = vrot.slane %v691_v55, 1 }
 0x128   : > { %v705_v18 = vadd.f32 %v697_v59, %v685_v11  ;;  %v706_v19 = vadd.f32 %v698_v50, %v686_v13  ;;  %v720_v62 = vadd.f32 %v712_v42, %v688_v35  ;;  %v830_v29 = vrot.slane %v5468_v60, 5 }
 0x129   : > { %v916_v63 = vrot.slane %v704_v36, 3  ;;  %v826_v45 = vsel %vm825_vm1, %v824_v47, %v5465_v17  ;;  %v721_v24 = vadd.f32 %v713_v46, %v689_v37  ;;  %v722_v26 = vadd.f32 %v714_v53, %v690_v41 }
 0x12a   : > { %v917_v43 = vrot.slane %v705_v18, 2  ;;  %v919_v51 = vrot.slane %v706_v19, 1  ;;  %v829_v25 = vsel %vm828_vm2, %v827_v57, %v826_v45  ;;  %v723_v27 = vadd.f32 %v715_v44, %v691_v55  ;;  %v2543_v18 = vld [vmem:[%s5417_s5] sm:$0xf] }
 0x12b   : > { %v832_v7 = vsel %vm831_vm3, %v830_v29, %v829_v25  ;;  %v929_v23 = vrot.slane %v720_v62, 3  ;;  %v930_v28 = vrot.slane %v721_v24, 2  ;;  %v707_v20 = vadd.f32 %v699_v48, %v687_v52  ;;  %v2534_v48 = vld [vmem:[%s5416_s4] sm:$0xf] }
 0x12c   : > { %v918_v32 = vsel %vm825_vm1, %v917_v43, %v916_v63  ;;  %v932_v4 = vrot.slane %v722_v26, 1  ;;  %v1053_v11 = vcombine.high %v1051_v9, %v1051_v9  ;;  %v4507_v50 = vmov 0.0   ;;  %v434_v26 = vld [vmem:[%s5421_s9] sm:$0x7] }
 0x12d   : > { %v920_v1 = vsel %vm828_vm2, %v919_v51, %v918_v32  ;;  %v931_v6 = vsel %vm825_vm1, %v930_v28, %v929_v23  ;;  %1193 = vmatprep.mubr.f32.mxu1 %v4507_v50  ;;  %2681 = vmatprep.mubr.f32.mxu0 %v4507_v50  ;;  %v4514_v19 = vmov 0   ;;  %v1091_v62 = vlaneseq  ;;  %v1077_v23 = vld [vmem:[%s5415_s3 + $0x4] sm:$0xf] }
 0x12e   : > { %v921_v8 = vsel %vm831_vm3, %v707_v20, %v920_v1  ;;  %v933_v5 = vsel %vm828_vm2, %v932_v4, %v931_v6  ;;  %4489 = vset.pattern.permute.xlu0 %v4514_v19  ;;  %4490 = vset.pattern.permute.xlu1 %v4514_v19  ;;  %v435_v6 = vld [vmem:[%s5422_s10] sm:$0x7] }
 0x12f   : > { %922 = vrot.lane.b32.xlu0 %v921_v8, %s4506_s17  ;;  %v934_v3 = vsel %vm831_vm3, %v723_v27, %v933_v5  ;;  %v4967_v63 = vand.u32 127, %v1091_v62  ;;  %v1099_v45 = vshrl.u32 %v1091_v62, 7  ;;  %vm4197_vm3 = vmneg %vm1030_vm4 }
 0x131   : > { %vm1122_vm12 = vcmp.lt.s32.totalorder %v4967_v63, 16  ;;  %v4972_v51 = vsub.s32 1, %v1099_v45  ;;  %v4974_v25 = vsub.s32 0, %v1099_v45  ;;  %v4984_v20 = vsub.s32 2, %v1099_v45 }
 0x132   : > { %vm1093_vm13 = vcmp.lt.s32.totalorder %v4967_v63, 17  ;;  %vm1420_vm15 = vcmp.lt.s32.totalorder %v4967_v63, 15  ;;  %vm1596_vm1 = vcmp.lt.s32.totalorder %v4967_v63, 1  ;;  %vm1903_vm2 = vcmp.lt.s32.totalorder %v4967_v63, 127 }
 0x133   : > { %v4988_v32 = vrot.slane %v434_v26, %v4972_v51  ;;  %v4991_v4 = vrot.slane %v434_v26, %v4974_v25 }
 0x167   : > { %v858_v39 = vpop.permute.xlu1 %857 }
 0x16b   : > { %v845_v30 = vpop.permute.xlu0 %844 }
 0x16c   : > { %v1031_v14 = vsel %vm1030_vm4, %v832_v7, %v845_v30 }
 0x16d   : > { %v1033_v15 = vsel %vm1032_vm6, %v1031_v14, %v858_v39  ;;  %v5005_v39 = vrot.slane %v434_v26, %v4984_v20 }
 0x171   : > { %v962_v40 = vpop.permute.xlu1 %961 }
 0x177   : > { %v948_v17 = vpop.permute.xlu0 %947 }
 0x178   : > { %v1044_v31 = vsel %vm1030_vm4, %v934_v3, %v948_v17  ;;  %v5013_v17 = vrot.slane %v435_v6, %v4972_v51 }
 0x179   : > { %v1045_v58 = vsel %vm1032_vm6, %v1044_v31, %v962_v40  ;;  %vm2380_vm6 = vcmp.lt.s32.totalorder %v4967_v63, 111 }
 0x17d   : > { %v976_v38 = vpop.permute.xlu1 %975 }
 0x17e   : > { %v1046_v0 = vsel %vm1034_vm5, %v1045_v58, %v976_v38 }
 0x183   : > { %v871_v33 = vpop.permute.xlu0 %870 }
 0x184   : > { %v990_v21 = vpop.permute.xlu1 %989  ;;  %v1035_v16 = vsel %vm1034_vm5, %v1033_v15, %v871_v33  ;;  %vm2063_vm5 = vcmp.lt.s32.totalorder %v4967_v63, 113 }
 0x185   : > { %v1047_v60 = vsel %vm1036_vm7, %v1046_v0, %v990_v21  ;;  %v5028_v0 = vrot.slane %v435_v6, %v4974_v25 }
 0x188   : > { %v884_v54 = vpop.permute.xlu0 %883 }
 0x189   : > { %v1037_v37 = vsel %vm1036_vm7, %v1035_v16, %v884_v54  ;;  %v1076_v54 = vld [vmem:[%s5415_s3] sm:$0xf] }
 0x18d   : > { %v1004_v49 = vpop.permute.xlu1 %1003 }
 0x18e   : > { %v1048_v12 = vsel %vm1038_vm8, %v1047_v60, %v1004_v49 }
 0x190   : > { %v897_v22 = vpop.permute.xlu0 %896 }
 0x191   : > { %v1039_v41 = vsel %vm1038_vm8, %v1037_v37, %v897_v22 }
 0x193   : > { %v1018_v61 = vpop.permute.xlu1 %1017 }
 0x194   : > { %v1049_v10 = vsel %vm1040_vm9, %v1048_v12, %v1018_v61  ;;  %v5036_v12 = vrot.slane %v435_v6, %v4984_v20 }
 0x197   : > { %v1028_v2 = vpop.permute.xlu1 %1027  ;;  %v910_v52 = vpop.permute.xlu0 %909 }
 0x198   : > { %v1050_v13 = vsel %vm1042_vm10, %v1049_v10, %v1028_v2  ;;  %v1041_v55 = vsel %vm1040_vm9, %v1039_v41, %v910_v52 }
 0x199   : > { %v1058_v34 = vrot.slane %v1050_v13, 4 }
 0x19b   : > { %v1063_v35 = vsel %vm1061_vm11, %v1053_v11, %v1058_v34  ;;  %v1078_v34 = vld [vmem:[%s5415_s3 + $0x8] sm:$0xf] }
 0x19c   : > { %1068 = vrot.lane.b32.xlu1 %v1063_v35, %s4501_s30 }
 0x1a1   : > { %v923_v56 = vpop.permute.xlu0 %922 }
 0x1a2   : > { %v1043_v42 = vsel %vm1042_vm10, %v1041_v55, %v923_v56  ;;  %v1079_v55 = vld [vmem:[%s5415_s3 + $0xc] sm:$0xf] }
 0x1a3   : > { %v1057_v46 = vrot.slane %v1043_v42, 4 }
 0x1a5   : > { %v1062_v59 = vsel %vm1061_vm11, %v1051_v9, %v1057_v46 }
 0x1a6   : > { %1066 = vrot.lane.b32.xlu0 %v1062_v59, %s4501_s30 }
 0x20e   : > { %v4916_v53 = vpop.permute.xlu1 %1068 }
 0x20f   : > { %v1075_v57 = vsel %vm1030_vm4, %v4916_v53, 0.0 }
 0x218   : > { %v4918_v36 = vpop.permute.xlu0 %1066 }
 0x219   : > { %v4923_v44 = vsel %vm1030_vm4, %v4918_v36, %v4916_v53  ;;  %v1074_v47 = vsel %vm1030_vm4, 0.0, %v4918_v36 }
 0x21a   : > { %1116 = vrot.lane.b32.xlu0 %v1074_v47, %s4501_s30  ;;  %1118 = vrot.lane.b32.xlu1 %v4923_v44, %s4501_s30 }
 0x21e   : > { %1120 = vrot.lane.b32.xlu0 %v1075_v57, %s4501_s30  ;;  %1085 = vrot.lane.b32.xlu1 %v1074_v47, %s4508_s24 }
 0x222   : > { %1087 = vrot.lane.b32.xlu0 %v4923_v44, %s4508_s24  ;;  %1089 = vrot.lane.b32.xlu1 %v1075_v57, %s4508_s24 }
 0x226   : > { %1414 = vrot.lane.b32.xlu0 %v1074_v47, %s4509_s25  ;;  %1416 = vrot.lane.b32.xlu1 %v4923_v44, %s4509_s25 }
 0x22a   : > { %1418 = vrot.lane.b32.xlu0 %v1075_v57, %s4509_s25  ;;  %1590 = vrot.lane.b32.xlu1 %v1074_v47, %s4510_s26 }
 0x22e   : > { %1592 = vrot.lane.b32.xlu0 %v4923_v44, %s4510_s26  ;;  %1594 = vrot.lane.b32.xlu1 %v1075_v57, %s4510_s26 }
 0x232   : > { %1899 = vrot.lane.b32.xlu0 %v4923_v44, %s4511_s27  ;;  %1901 = vrot.lane.b32.xlu1 %v1075_v57, %s4511_s27 }
 0x236   : > { %1897 = vrot.lane.b32.xlu0 %v1074_v47, %s4511_s27  ;;  %2059 = vrot.lane.b32.xlu1 %v4923_v44, %s4512_s28 }
 0x23a   : > { %2061 = vrot.lane.b32.xlu0 %v1075_v57, %s4512_s28  ;;  %2057 = vrot.lane.b32.xlu1 %v1074_v47, %s4512_s28 }
 0x23e   : > { %2219 = vrot.lane.b32.xlu0 %v4923_v44, %s4506_s17  ;;  %2221 = vrot.lane.b32.xlu1 %v1075_v57, %s4506_s17 }
 0x242   : > { %2217 = vrot.lane.b32.xlu0 %v1074_v47, %s4506_s17  ;;  %2376 = vrot.lane.b32.xlu1 %v4923_v44, %s4513_s29 }
 0x246   : > { %2378 = vrot.lane.b32.xlu0 %v1075_v57, %s4513_s29  ;;  %2374 = vrot.lane.b32.xlu1 %v1074_v47, %s4513_s29  ;;  %v1080_v57 = vld [vmem:[%s5415_s3 + $0x10] sm:$0xf] }
 0x24a   : > { %2537 = vperm.xlu0 %4489, %v2534_v48   ;;  %2546 = vperm.xlu1 %4490, %v2543_v18  }
 0x28c   : > { %v1117_v29 = vpop.permute.xlu0 %1116  ;;  %v1119_v24 = vpop.permute.xlu1 %1118 }
 0x28d   : > { %v1124_v43 = vsel %vm1122_vm12, %v1117_v29, %v1119_v24 }
 0x28e   : > { %1129 = vmatprep.subr.mxu1 %v1124_v43 }
 0x290   : > { %v1121_v7 = vpop.permute.xlu0 %1120  ;;  %v1086_v27 = vpop.permute.xlu1 %1085 }
 0x291   : > { %v1125_v28 = vsel %vm1122_vm12, %v1121_v7, %v1117_v29  ;;  %v1123_v1 = vsel %vm1122_vm12, %v1119_v24, %v1121_v7 }
 0x292   : > { %1130 = vmatpush1.msra.mxu1 %v1125_v28 }
 0x293   : > { %4189 = vmatmul.mubr.msk.f32.vlgmr.msra.gmra.mrb[2].mxu1 %vm442_vm0, %v1077_v23  ;;  %4309 = vmatprep.subr.mxu1 %v4507_v50 }
 0x294   : > { %v1088_v8 = vpop.permute.xlu0 %1087  ;;  %4310 = vmatpush3.msra.mxu1 %v1123_v1  ;;  %v1090_v5 = vpop.permute.xlu1 %1089  ;;  %4311 = vmatprep.mubr.msk.f32.mxu1 %vm4515_vm14, %v4507_v50  ;;  %v1082_v1 = vld [vmem:[%s5415_s3 + $0x18] sm:$0xf] }
 0x295   : > { %v1095_v3 = vsel %vm1093_vm13, %v1086_v27, %v1088_v8  ;;  %v1096_v40 = vsel %vm1093_vm13, %v1090_v5, %v1086_v27  ;;  %v1094_v21 = vsel %vm1093_vm13, %v1088_v8, %v1090_v5 }
 0x296   : > { %v1114_v30 = vmul.f32 %v4988_v32, %v1095_v3  ;;  %v1113_v38 = vmul.f32 %v4991_v4, %v1096_v40  ;;  %v1115_v58 = vmul.f32 %v5005_v39, %v1094_v21  ;;  %v1083_v21 = vld [vmem:[%s5415_s3 + $0x1c] sm:$0xf] }
 0x297   : > { %4312 = vmatmul.mubr.msk.f32.vlgmr.msra.gmra.mrb[4].mxu1 %vm442_vm0, %v1077_v23 }
 0x298   : > { %v1415_v33 = vpop.permute.xlu0 %1414  ;;  %1273 = vmatprep.subr.mxu1 %v1114_v30  ;;  %v1417_v49 = vpop.permute.xlu1 %1416  ;;  %1337 = vmatprep.mubr.f32.mxu1 %v4507_v50 }
 0x299   : > { %v1422_v31 = vsel %vm1420_vm15, %v1415_v33, %v1417_v49  ;;  %1274 = vmatpush1.msra.mxu1 %v1113_v38 }
 0x29a   : > { %v1441_v61 = vmul.f32 %v5013_v17, %v1422_v31  ;;  %4314 = vmatprep.subr.mxu1 %v4507_v50 }
 0x29b   : > { %4191 = vmatmul.mubr.msk.f32.vlgmr.msra.gmra.mrb[2].mxu1 %vm442_vm0, %v1076_v54 }
 0x29c   : > { %4315 = vmatpush3.msra.mxu1 %v1115_v58  ;;  %v1419_v9 = vpop.permute.xlu0 %1418  ;;  %v1591_v60 = vpop.permute.xlu1 %1590  ;;  %4316 = vmatprep.mubr.msk.f32.mxu1 %vm4515_vm14, %v4507_v50 }
 0x29d   : > { %v1423_v22 = vsel %vm1420_vm15, %v1419_v9, %v1415_v33  ;;  %1446 = vmatprep.subr.mxu1 %v1441_v61  ;;  %v1421_v2 = vsel %vm1420_vm15, %v1417_v49, %v1419_v9  ;;  %v1084_v61 = vld [vmem:[%s5415_s3 + $0x20] sm:$0xf] }
 0x29e   : > { %v1440_v10 = vmul.f32 %v5028_v0, %v1423_v22  ;;  %v1442_v52 = vmul.f32 %v5036_v12, %v1421_v2 }
 0x29f   : > { %4317 = vmatmul.mubr.msk.f32.vlgmr.msra.gmra.mrb[4].mxu1 %vm442_vm0, %v1076_v54 }
 0x2a0   : > { %v1593_v11 = vpop.permute.xlu0 %1592  ;;  %1447 = vmatpush1.msra.mxu1 %v1440_v10  ;;  %v1595_v13 = vpop.permute.xlu1 %1594  ;;  %1510 = vmatprep.mubr.f32.mxu1 %v4507_v50  ;;  %v436_v10 = vld [vmem:[%s5423_s11] sm:$0x7] }
 0x2a1   : > { %v1598_v14 = vsel %vm1596_vm1, %v1591_v60, %v1593_v11  ;;  %4319 = vmatprep.subr.mxu1 %v4507_v50  ;;  %v1599_v15 = vsel %vm1596_vm1, %v1595_v13, %v1591_v60  ;;  %v1597_v37 = vsel %vm1596_vm1, %v1593_v11, %v1595_v13 }
 0x2a2   : > { %v1601_v35 = vmul.f32 %v1598_v14, %v4988_v32  ;;  %v1600_v16 = vmul.f32 %v1599_v15, %v4991_v4  ;;  %v1602_v56 = vmul.f32 %v1597_v37, %v5005_v39  ;;  %v2559_v14 = vrot.slane %v436_v10, %v4974_v25  ;;  %v4072_v25 = vld [vmem:[%s5419_s7] sm:$0xf] }
 0x2a3   : > { %4193 = vmatmul.mubr.msk.f32.vlgmr.msra.gmra.mrb[2].mxu1 %vm442_vm0, %v1078_v34 }
 0x2a4   : > { %4320 = vmatpush3.msra.mxu1 %v1442_v52  ;;  %4321 = vmatprep.mubr.msk.f32.mxu1 %vm4515_vm14, %v4507_v50  ;;  %v1900_v41 = vpop.permute.xlu0 %1899  ;;  %v1902_v42 = vpop.permute.xlu1 %1901 }
 0x2a5   : > { %1606 = vmatprep.subr.mxu1 %v1601_v35  ;;  %v1904_v59 = vsel %vm1903_vm2, %v1900_v41, %v1902_v42  ;;  %v2563_v35 = vrot.slane %v436_v10, %v4972_v51 }
 0x2a7   : > { %4322 = vmatmul.mubr.msk.f32.vlgmr.msra.gmra.mrb[4].mxu1 %vm442_vm0, %v1078_v34 }
 0x2a8   : > { %1607 = vmatpush1.msra.mxu1 %v1600_v16  ;;  %1670 = vmatprep.mubr.f32.mxu1 %v4507_v50  ;;  %v1898_v46 = vpop.permute.xlu0 %1897  ;;  %v2060_v47 = vpop.permute.xlu1 %2059 }
 0x2a9   : > { %4324 = vmatprep.subr.mxu1 %v4507_v50  ;;  %v1905_v48 = vsel %vm1903_vm2, %v1898_v46, %v1900_v41  ;;  %v1906_v62 = vsel %vm1903_vm2, %v1902_v42, %v1898_v46 }
 0x2aa   : > { %v1909_v24 = vmul.f32 %v1906_v62, %v5036_v12 }
 0x2ab   : > { %4195 = vmatmul.mubr.msk.f32.vlgmr.msra.gmra.mrb[2].mxu1 %vm442_vm0, %v1079_v55 }
 0x2ac   : > { %4325 = vmatpush3.msra.mxu1 %v1602_v56  ;;  %4326 = vmatprep.mubr.msk.f32.mxu1 %vm4515_vm14, %v4507_v50  ;;  %v2062_v18 = vpop.permute.xlu0 %2061  ;;  %v2058_v19 = vpop.permute.xlu1 %2057 }
 0x2ad   : > { %1753 = vmatprep.subr.mxu1 %v4923_v44  ;;  %v1908_v44 = vmul.f32 %v1904_v59, %v5013_v17  ;;  %v2064_v45 = vsel %vm2063_vm5, %v2060_v47, %v2062_v18  ;;  %v2065_v26 = vsel %vm2063_vm5, %v2058_v19, %v2060_v47  ;;  %v2066_v23 = vsel %vm2063_vm5, %v2062_v18, %v2058_v19  ;;  %v2575_v19 = vld [vmem:[%s5418_s6 + $0x4] sm:$0xf] }
 0x2ae   : > { %v2068_v43 = vmul.f32 %v2064_v45, %v4988_v32  ;;  %v2067_v27 = vmul.f32 %v2065_v26, %v4991_v4  ;;  %v2069_v6 = vmul.f32 %v2066_v23, %v5005_v39  ;;  %v2567_v59 = vrot.slane %v436_v10, %v4984_v20  ;;  %v4081_v20 = vld [vmem:[%s5420_s8] sm:$0xf] }
 0x2af   : > { %4327 = vmatmul.mubr.msk.f32.vlgmr.msra.gmra.mrb[4].mxu1 %vm442_vm0, %v1079_v55 }
 0x2b0   : > { %4198 = vmatpush1.msk.msra.mxu1 %vm4197_vm3, %v4918_v36  ;;  %1817 = vmatprep.mubr.f32.mxu1 %v4507_v50  ;;  %v1907_v36 = vmul.f32 %v1905_v48, %v5028_v0  ;;  %v2220_v29 = vpop.permute.xlu0 %2219  ;;  %v2222_v7 = vpop.permute.xlu1 %2221 }
 0x2b1   : > { %4329 = vmatprep.subr.mxu1 %v4507_v50 }
 0x2b3   : > { %4199 = vmatmul.mubr.msk.f32.vlgmr.msra.gmra.mrb[2].mxu1 %vm442_vm0, %v1080_v57 }
 0x2b4   : > { %4330 = vmatpush3.msk.msra.mxu1 %vm1030_vm4, %v4916_v53  ;;  %4331 = vmatprep.mubr.msk.f32.mxu1 %vm4515_vm14, %v4507_v50  ;;  %v1081_v53 = vld [vmem:[%s5415_s3 + $0x14] sm:$0xf]  ;;  %v2218_v28 = vpop.permute.xlu0 %2217  ;;  %vm2223_vm4 = vcmp.lt.s32.totalorder %v4967_v63, 112  ;;  %v2377_v8 = vpop.permute.xlu1 %2376 }
 0x2b5   : > { %1913 = vmatprep.subr.mxu1 %v1908_v44  ;;  %v2224_v5 = vsel %vm2223_vm4, %v2220_v29, %v2222_v7  ;;  %v2225_v40 = vsel %vm2223_vm4, %v2218_v28, %v2220_v29  ;;  %v2226_v33 = vsel %vm2223_vm4, %v2222_v7, %v2218_v28 }
 0x2b7   : > { %4332 = vmatmul.mubr.msk.f32.vlgmr.msra.gmra.mrb[4].mxu1 %vm442_vm0, %v1080_v57 }
 0x2b8   : > { %1914 = vmatpush1.msra.mxu1 %v1907_v36  ;;  %1977 = vmatprep.mubr.f32.mxu1 %v4507_v50  ;;  %v2379_v3 = vpop.permute.xlu0 %2378  ;;  %v2375_v38 = vpop.permute.xlu1 %2374 }
 0x2b9   : > { %4334 = vmatprep.subr.mxu1 %v4507_v50  ;;  %v2381_v30 = vsel %vm2380_vm6, %v2377_v8, %v2379_v3  ;;  %v2382_v54 = vsel %vm2380_vm6, %v2375_v38, %v2377_v8  ;;  %v2383_v58 = vsel %vm2380_vm6, %v2379_v3, %v2375_v38 }
 0x2ba   : > { %v2385_v49 = vmul.f32 %v2381_v30, %v5013_v17  ;;  %v2384_v31 = vmul.f32 %v2382_v54, %v5028_v0  ;;  %v2386_v9 = vmul.f32 %v2383_v58, %v5036_v12  ;;  %v2576_v54 = vld [vmem:[%s5418_s6 + $0x8] sm:$0xf] }
 0x2bb   : > { %4202 = vmatmul.mubr.msk.f32.vlgmr.msra.gmra.mrb[2].mxu1 %vm442_vm0, %v1081_v53 }
 0x2bc   : > { %4335 = vmatpush3.msra.mxu1 %v1909_v24  ;;  %4336 = vmatprep.mubr.msk.f32.mxu1 %vm4515_vm14, %v4507_v50 }
 0x2bd   : > { %2073 = vmatprep.subr.mxu1 %v2068_v43 }
 0x2bf   : > { %4337 = vmatmul.mubr.msk.f32.vlgmr.msra.gmra.mrb[4].mxu1 %vm442_vm0, %v1081_v53 }
 0x2c0   : > { %2074 = vmatpush1.msra.mxu1 %v2067_v27  ;;  %2137 = vmatprep.mubr.f32.mxu1 %v4507_v50 }
 0x2c1   : > { %4339 = vmatprep.subr.mxu1 %v4507_v50 }
 0x2c3   : > { %4204 = vmatmul.mubr.msk.f32.vlgmr.msra.gmra.mrb[2].mxu1 %vm442_vm0, %v1082_v1 }
 0x2c4   : > { %4340 = vmatpush3.msra.mxu1 %v2069_v6  ;;  %4341 = vmatprep.mubr.msk.f32.mxu1 %vm4515_vm14, %v4507_v50 }
 0x2c5   : > { %2230 = vmatprep.subr.mxu1 %v2224_v5 }
 0x2c7   : > { %4342 = vmatmul.mubr.msk.f32.vlgmr.msra.gmra.mrb[4].mxu1 %vm442_vm0, %v1082_v1  ;;  %v2574_v1 = vld [vmem:[%s5418_s6] sm:$0xf] }
 0x2c8   : > { %2231 = vmatpush1.msra.mxu1 %v2225_v40  ;;  %2294 = vmatprep.mubr.f32.mxu1 %v4507_v50 }
 0x2c9   : > { %4344 = vmatprep.subr.mxu1 %v4507_v50  ;;  %v2538_v60 = vpop.permute.xlu0 %2537  ;;  %v2547_v2 = vpop.permute.xlu1 %2546 }
 0x2cb   : > { %4206 = vmatmul.mubr.msk.f32.vlgmr.msra.gmra.mrb[2].mxu1 %vm442_vm0, %v1083_v21 }
 0x2cc   : > { %4345 = vmatpush3.msra.mxu1 %v2226_v33  ;;  %4346 = vmatprep.mubr.msk.f32.mxu1 %vm4515_vm14, %v4507_v50 }
 0x2cd   : > { %2390 = vmatprep.subr.mxu1 %v2385_v49 }
 0x2cf   : > { %4347 = vmatmul.mubr.msk.f32.vlgmr.msra.gmra.mrb[4].mxu1 %vm442_vm0, %v1083_v21 }
 0x2d0   : > { %2391 = vmatpush1.msra.mxu1 %v2384_v31  ;;  %2454 = vmatprep.mubr.f32.mxu1 %v4507_v50 }
 0x2d1   : > { %4349 = vmatprep.subr.mxu1 %v4507_v50 }
 0x2d3   : > { %4208 = vmatmul.mubr.msk.f32.vlgmr.msra.gmra.mrb[2].mxu1 %vm442_vm0, %v1084_v61 }
 0x2d4   : > { %4350 = vmatpush3.msra.mxu1 %v2386_v9  ;;  %4351 = vmatprep.mubr.msk.f32.mxu1 %vm4515_vm14, %v4507_v50 }
 0x2d7   : > { %4352 = vmatmul.mubr.msk.f32.vlgmr.msra.gmra.mrb[4].mxu1 %vm442_vm0, %v1084_v61  ;;  %vm2604_vm0 = vcmask 31744  }
 0x3a6   : > { %v2456_v22 = vpop.f32.mrb[2].mxu1 }
 0x3a7   : > { %v2540_v11 = vmul.f32 %v2538_v60, %v2456_v22  ;;  %v2458_v13 = vpop.f32.mrb[3].mxu1 }
 0x3a8   : > { %v2541_v34 = vmul.f32 %v2538_v60, %v2458_v13 }
 0x3a9   : > { %v2549_v52 = vadd.f32 %v2547_v2, %v2540_v11  ;;  %v2577_v11 = vld [vmem:[%s5418_s6 + $0xc] sm:$0xf] }
 0x3aa   : > { %v2550_v15 = vadd.f32 %v2547_v2, %v2541_v34  ;;  %v2527_v16 = vpop.f32.mrb[4].mxu1 }
 0x3ab   : > { %v2552_v37 = vmax.f32 %v2549_v52, 0.0  ;;  %v2542_v41 = vmul.f32 %v2538_v60, %v2527_v16  ;;  %v4353_v55 = vpop.f32.mrb[5].mxu1 }
 0x3ac   : > { %v2553_v56 = vmax.f32 %v2550_v15, 0.0  ;;  %v2578_v15 = vld [vmem:[%s5418_s6 + $0x10] sm:$0xf] }
 0x3ad   : > { %v5163_v42 = vmul.f32 %v2559_v14, %v2552_v37  ;;  %v2551_v46 = vadd.f32 %v2547_v2, %v2542_v41 }
 0x3ae   : > { %v5166_v47 = vmul.f32 %v2563_v35, %v2553_v56 }
 0x3af   : > { %v2554_v57 = vmax.f32 %v2551_v46, 0.0  ;;  %2595 = vrot.lane.b32.xlu1 %v5163_v42, %s4501_s30 }
 0x3b0   : > { %2597 = vrot.lane.b32.xlu0 %v5166_v47, %s4501_s30 }
 0x3b1   : > { %v5172_v51 = vmul.f32 %v2567_v59, %v2554_v57  ;;  %v2579_v59 = vld [vmem:[%s5418_s6 + $0x14] sm:$0xf] }
 0x3b3   : > { %2599 = vrot.lane.b32.xlu1 %v5172_v51, %s4501_s30 }
 0x3b4   : > { %2583 = vrot.lane.b32.xlu0 %v5163_v42, %s4508_s24 }
 0x3b7   : > { %2585 = vrot.lane.b32.xlu1 %v5166_v47, %s4508_s24 }
 0x3b8   : > { %2587 = vrot.lane.b32.xlu0 %v5172_v51, %s4508_s24 }
 0x3bb   : > { %2911 = vrot.lane.b32.xlu1 %v5163_v42, %s4509_s25 }
 0x3bc   : > { %2913 = vrot.lane.b32.xlu0 %v5166_v47, %s4509_s25 }
 0x3bf   : > { %2915 = vrot.lane.b32.xlu1 %v5172_v51, %s4509_s25 }
 0x3c0   : > { %3079 = vrot.lane.b32.xlu0 %v5163_v42, %s4510_s26 }
 0x3c3   : > { %3081 = vrot.lane.b32.xlu1 %v5166_v47, %s4510_s26 }
 0x3c4   : > { %3083 = vrot.lane.b32.xlu0 %v5172_v51, %s4510_s26 }
 0x3c7   : > { %3405 = vrot.lane.b32.xlu1 %v5166_v47, %s4511_s27 }
 0x3c8   : > { %3407 = vrot.lane.b32.xlu0 %v5172_v51, %s4511_s27 }
 0x3cb   : > { %3403 = vrot.lane.b32.xlu1 %v5163_v42, %s4511_s27 }
 0x3cc   : > { %3573 = vrot.lane.b32.xlu0 %v5166_v47, %s4512_s28 }
 0x3cf   : > { %3575 = vrot.lane.b32.xlu1 %v5172_v51, %s4512_s28 }
 0x3d0   : > { %3571 = vrot.lane.b32.xlu0 %v5163_v42, %s4512_s28 }
 0x3d3   : > { %3741 = vrot.lane.b32.xlu1 %v5166_v47, %s4506_s17 }
 0x3d4   : > { %3743 = vrot.lane.b32.xlu0 %v5172_v51, %s4506_s17 }
 0x3d7   : > { %3739 = vrot.lane.b32.xlu1 %v5163_v42, %s4506_s17 }
 0x3d8   : > { %3906 = vrot.lane.b32.xlu0 %v5166_v47, %s4513_s29 }
 0x3db   : > { %3908 = vrot.lane.b32.xlu1 %v5172_v51, %s4513_s29 }
 0x3dc   : > { %3904 = vrot.lane.b32.xlu0 %v5163_v42, %s4513_s29 }
 0x3df   : > { %4075 = vperm.xlu1 %4490, %v4072_v25  }
 0x3e0   : > { %4084 = vperm.xlu0 %4489, %v4081_v20  }
 0x421   : > { %v2596_v44 = vpop.permute.xlu1 %2595 }
 0x422   : > { %v2598_v48 = vpop.permute.xlu0 %2597 }
 0x423   : > { %v2602_v18 = vsel %vm1122_vm12, %v2596_v44, %v2598_v48 }
 0x424   : > { %4210 = vmatprep.subr.msk.mxu0 %vm1061_vm11, %v2602_v18 }
 0x425   : > { %v2600_v36 = vpop.permute.xlu1 %2599 }
 0x426   : > { %v2603_v62 = vsel %vm1122_vm12, %v2600_v36, %v2596_v44  ;;  %v2584_v45 = vpop.permute.xlu0 %2583  ;;  %v2601_v53 = vsel %vm1122_vm12, %v2598_v48, %v2600_v36 }
 0x427   : > { %4211 = vmatpush1.msk.msra.mxu0 %vm1061_vm11, %v2603_v62 }
 0x428   : > { %4212 = vmatmul.mubr.msk.f32.vlgmr.msra.gmra.mrb[2].mxu0 %vm2604_vm0, %v2575_v19  ;;  %4354 = vmatprep.subr.mxu0 %v4507_v50 }
 0x429   : > { %4355 = vmatpush3.msk.msra.mxu0 %vm1061_vm11, %v2601_v53  ;;  %v2586_v29 = vpop.permute.xlu1 %2585  ;;  %4356 = vmatprep.mubr.msk.f32.mxu0 %vm4515_vm14, %v4507_v50 }
 0x42a   : > { %v2590_v24 = vsel %vm1093_vm13, %v2584_v45, %v2586_v29  ;;  %v2588_v43 = vpop.permute.xlu0 %2587 }
 0x42b   : > { %v2593_v26 = vmul.f32 %v2590_v24, %v4988_v32  ;;  %v2591_v7 = vsel %vm1093_vm13, %v2588_v43, %v2584_v45  ;;  %v2589_v27 = vsel %vm1093_vm13, %v2586_v29, %v2588_v43  ;;  %v2581_v29 = vld [vmem:[%s5418_s6 + $0x1c] sm:$0xf] }
 0x42c   : > { %v2592_v23 = vmul.f32 %v2591_v7, %v4991_v4  ;;  %4357 = vmatmul.mubr.msk.f32.vlgmr.msra.gmra.mrb[4].mxu0 %vm2604_vm0, %v2575_v19  ;;  %v2594_v8 = vmul.f32 %v2589_v27, %v5005_v39 }
 0x42d   : > { %4215 = vmatprep.subr.msk.mxu0 %vm1061_vm11, %v2593_v26  ;;  %v2912_v28 = vpop.permute.xlu1 %2911  ;;  %2834 = vmatprep.mubr.f32.mxu0 %v4507_v50 }
 0x42e   : > { %v2914_v6 = vpop.permute.xlu0 %2913  ;;  %4216 = vmatpush1.msk.msra.mxu0 %vm1061_vm11, %v2592_v23 }
 0x42f   : > { %v2918_v5 = vsel %vm1420_vm15, %v2912_v28, %v2914_v6  ;;  %4359 = vmatprep.subr.mxu0 %v4507_v50 }
 0x430   : > { %v2921_v3 = vmul.f32 %v2918_v5, %v5013_v17  ;;  %4217 = vmatmul.mubr.msk.f32.vlgmr.msra.gmra.mrb[2].mxu0 %vm2604_vm0, %v2574_v1 }
 0x431   : > { %4360 = vmatpush3.msk.msra.mxu0 %vm1061_vm11, %v2594_v8  ;;  %v2916_v40 = vpop.permute.xlu1 %2915  ;;  %4361 = vmatprep.mubr.msk.f32.mxu0 %vm4515_vm14, %v4507_v50 }
 0x432   : > { %v2919_v30 = vsel %vm1420_vm15, %v2916_v40, %v2912_v28  ;;  %v3080_v38 = vpop.permute.xlu0 %3079  ;;  %4220 = vmatprep.subr.msk.mxu0 %vm1061_vm11, %v2921_v3  ;;  %v2917_v33 = vsel %vm1420_vm15, %v2914_v6, %v2916_v40 }
 0x433   : > { %v2920_v21 = vmul.f32 %v2919_v30, %v5028_v0  ;;  %v2922_v61 = vmul.f32 %v2917_v33, %v5036_v12 }
 0x434   : > { %4362 = vmatmul.mubr.msk.f32.vlgmr.msra.gmra.mrb[4].mxu0 %vm2604_vm0, %v2574_v1 }
 0x435   : > { %4221 = vmatpush1.msk.msra.mxu0 %vm1061_vm11, %v2920_v21  ;;  %v3082_v49 = vpop.permute.xlu1 %3081  ;;  %2999 = vmatprep.mubr.f32.mxu0 %v4507_v50 }
 0x436   : > { %v3086_v31 = vsel %vm1596_vm1, %v3080_v38, %v3082_v49  ;;  %v3084_v58 = vpop.permute.xlu0 %3083  ;;  %4364 = vmatprep.subr.mxu0 %v4507_v50 }
 0x437   : > { %v3089_v9 = vmul.f32 %v3086_v31, %v4988_v32  ;;  %v3087_v60 = vsel %vm1596_vm1, %v3084_v58, %v3080_v38  ;;  %v3085_v10 = vsel %vm1596_vm1, %v3082_v49, %v3084_v58 }
 0x438   : > { %4222 = vmatmul.mubr.msk.f32.vlgmr.msra.gmra.mrb[2].mxu0 %vm2604_vm0, %v2576_v54  ;;  %v3088_v22 = vmul.f32 %v3087_v60, %v4991_v4  ;;  %v3090_v13 = vmul.f32 %v3085_v10, %v5005_v39 }
 0x439   : > { %4365 = vmatpush3.msk.msra.mxu0 %vm1061_vm11, %v2922_v61  ;;  %4366 = vmatprep.mubr.msk.f32.mxu0 %vm4515_vm14, %v4507_v50  ;;  %v3406_v2 = vpop.permute.xlu1 %3405 }
 0x43a   : > { %4225 = vmatprep.subr.msk.mxu0 %vm1061_vm11, %v3089_v9  ;;  %v3408_v34 = vpop.permute.xlu0 %3407 }
 0x43b   : > { %v3409_v52 = vsel %vm1903_vm2, %v3406_v2, %v3408_v34 }
 0x43c   : > { %4367 = vmatmul.mubr.msk.f32.vlgmr.msra.gmra.mrb[4].mxu0 %vm2604_vm0, %v2576_v54  ;;  %v3413_v16 = vmul.f32 %v3409_v52, %v5013_v17 }
 0x43d   : > { %4226 = vmatpush1.msk.msra.mxu0 %vm1061_vm11, %v3088_v22  ;;  %3167 = vmatprep.mubr.f32.mxu0 %v4507_v50  ;;  %v3404_v14 = vpop.permute.xlu1 %3403 }
 0x43e   : > { %4369 = vmatprep.subr.mxu0 %v4507_v50  ;;  %v3574_v35 = vpop.permute.xlu0 %3573  ;;  %v3410_v37 = vsel %vm1903_vm2, %v3404_v14, %v3406_v2 }
 0x43f   : > { %v3412_v55 = vmul.f32 %v3410_v37, %v5028_v0 }
 0x440   : > { %4227 = vmatmul.mubr.msk.f32.vlgmr.msra.gmra.mrb[2].mxu0 %vm2604_vm0, %v2577_v11 }
 0x441   : > { %4370 = vmatpush3.msk.msra.mxu0 %vm1061_vm11, %v3090_v13  ;;  %4371 = vmatprep.mubr.msk.f32.mxu0 %vm4515_vm14, %v4507_v50  ;;  %v3576_v41 = vpop.permute.xlu1 %3575 }
 0x442   : > { %4230 = vmatprep.subr.msk.mxu0 %vm1061_vm11, %v5166_v47  ;;  %v3572_v56 = vpop.permute.xlu0 %3571  ;;  %v3577_v46 = vsel %vm2063_vm5, %v3574_v35, %v3576_v41 }
 0x443   : > { %v3578_v25 = vsel %vm2063_vm5, %v3572_v56, %v3574_v35  ;;  %v3579_v48 = vsel %vm2063_vm5, %v3576_v41, %v3572_v56 }
 0x444   : > { %4372 = vmatmul.mubr.msk.f32.vlgmr.msra.gmra.mrb[4].mxu0 %vm2604_vm0, %v2577_v11  ;;  %v3580_v44 = vmul.f32 %v3578_v25, %v4991_v4  ;;  %v3582_v36 = vmul.f32 %v3579_v48, %v5005_v39 }
 0x445   : > { %4231 = vmatpush1.msk.msra.mxu0 %vm1061_vm11, %v5163_v42  ;;  %3323 = vmatprep.mubr.f32.mxu0 %v4507_v50  ;;  %v3411_v42 = vsel %vm1903_vm2, %v3408_v34, %v3404_v14  ;;  %v3742_v47 = vpop.permute.xlu1 %3741 }
 0x446   : > { %4374 = vmatprep.subr.mxu0 %v4507_v50  ;;  %v3414_v57 = vmul.f32 %v3411_v42, %v5036_v12  ;;  %v3744_v20 = vpop.permute.xlu0 %3743 }
 0x447   : > { %v3745_v4 = vsel %vm2223_vm4, %v3742_v47, %v3744_v20 }
 0x448   : > { %4232 = vmatmul.mubr.msk.f32.vlgmr.msra.gmra.mrb[2].mxu0 %vm2604_vm0, %v2578_v15 }
 0x449   : > { %4375 = vmatpush3.msk.msra.mxu0 %vm1061_vm11, %v5172_v51  ;;  %4376 = vmatprep.mubr.msk.f32.mxu0 %vm4515_vm14, %v4507_v50  ;;  %v3581_v51 = vmul.f32 %v3577_v46, %v4988_v32  ;;  %v3740_v18 = vpop.permute.xlu1 %3739  ;;  %v2580_v32 = vld [vmem:[%s5418_s6 + $0x18] sm:$0xf] }
 0x44a   : > { %4235 = vmatprep.subr.msk.mxu0 %vm1061_vm11, %v3413_v16  ;;  %v3907_v19 = vpop.permute.xlu0 %3906  ;;  %v3746_v45 = vsel %vm2223_vm4, %v3740_v18, %v3742_v47  ;;  %v3747_v24 = vsel %vm2223_vm4, %v3744_v20, %v3740_v18 }
 0x44c   : > { %4377 = vmatmul.mubr.msk.f32.vlgmr.msra.gmra.mrb[4].mxu0 %vm2604_vm0, %v2578_v15 }
 0x44d   : > { %4236 = vmatpush1.msk.msra.mxu0 %vm1061_vm11, %v3412_v55  ;;  %3491 = vmatprep.mubr.f32.mxu0 %v4507_v50  ;;  %v3909_v62 = vpop.permute.xlu1 %3908 }
 0x44e   : > { %4379 = vmatprep.subr.mxu0 %v4507_v50  ;;  %v3910_v39 = vsel %vm2380_vm6, %v3907_v19, %v3909_v62  ;;  %v3905_v53 = vpop.permute.xlu0 %3904 }
 0x44f   : > { %v3914_v43 = vmul.f32 %v3910_v39, %v5013_v17  ;;  %v3911_v26 = vsel %vm2380_vm6, %v3905_v53, %v3907_v19  ;;  %v3912_v27 = vsel %vm2380_vm6, %v3909_v62, %v3905_v53  ;;  %v2582_v17 = vld [vmem:[%s5418_s6 + $0x20] sm:$0xf] }
 0x450   : > { %4237 = vmatmul.mubr.msk.f32.vlgmr.msra.gmra.mrb[2].mxu0 %vm2604_vm0, %v2579_v59  ;;  %v3913_v7 = vmul.f32 %v3911_v26, %v5028_v0  ;;  %v3915_v23 = vmul.f32 %v3912_v27, %v5036_v12 }
 0x451   : > { %4380 = vmatpush3.msk.msra.mxu0 %vm1061_vm11, %v3414_v57  ;;  %4381 = vmatprep.mubr.msk.f32.mxu0 %vm4515_vm14, %v4507_v50 }
 0x452   : > { %4240 = vmatprep.subr.msk.mxu0 %vm1061_vm11, %v3581_v51 }
 0x454   : > { %4382 = vmatmul.mubr.msk.f32.vlgmr.msra.gmra.mrb[4].mxu0 %vm2604_vm0, %v2579_v59 }
 0x455   : > { %4241 = vmatpush1.msk.msra.mxu0 %vm1061_vm11, %v3580_v44  ;;  %3659 = vmatprep.mubr.f32.mxu0 %v4507_v50 }
 0x456   : > { %4384 = vmatprep.subr.mxu0 %v4507_v50 }
 0x458   : > { %4242 = vmatmul.mubr.msk.f32.vlgmr.msra.gmra.mrb[2].mxu0 %vm2604_vm0, %v2580_v32 }
 0x459   : > { %4385 = vmatpush3.msk.msra.mxu0 %vm1061_vm11, %v3582_v36  ;;  %4386 = vmatprep.mubr.msk.f32.mxu0 %vm4515_vm14, %v4507_v50 }
 0x45a   : > { %4245 = vmatprep.subr.msk.mxu0 %vm1061_vm11, %v3745_v4 }
 0x45c   : > { %4387 = vmatmul.mubr.msk.f32.vlgmr.msra.gmra.mrb[4].mxu0 %vm2604_vm0, %v2580_v32 }
 0x45d   : > { %4246 = vmatpush1.msk.msra.mxu0 %vm1061_vm11, %v3746_v45  ;;  %3824 = vmatprep.mubr.f32.mxu0 %v4507_v50 }
 0x45e   : > { %4389 = vmatprep.subr.mxu0 %v4507_v50  ;;  %v4076_v63 = vpop.permute.xlu1 %4075 }
 0x45f   : > { %v4085_v6 = vpop.permute.xlu0 %4084 }
 0x460   : > { %4247 = vmatmul.mubr.msk.f32.vlgmr.msra.gmra.mrb[2].mxu0 %vm2604_vm0, %v2581_v29 }
 0x461   : > { %4390 = vmatpush3.msk.msra.mxu0 %vm1061_vm11, %v3747_v24  ;;  %4391 = vmatprep.mubr.msk.f32.mxu0 %vm4515_vm14, %v4507_v50 }
 0x462   : > { %4250 = vmatprep.subr.msk.mxu0 %vm1061_vm11, %v3914_v43 }
 0x464   : > { %4392 = vmatmul.mubr.msk.f32.vlgmr.msra.gmra.mrb[4].mxu0 %vm2604_vm0, %v2581_v29 }
 0x465   : > { %4251 = vmatpush1.msk.msra.mxu0 %vm1061_vm11, %v3913_v7  ;;  %3992 = vmatprep.mubr.f32.mxu0 %v4507_v50 }
 0x466   : > { %4394 = vmatprep.subr.mxu0 %v4507_v50 }
 0x468   : > { %4252 = vmatmul.mubr.msk.f32.vlgmr.msra.gmra.mrb[2].mxu0 %vm2604_vm0, %v2582_v17 }
 0x469   : > { %4395 = vmatpush3.msk.msra.mxu0 %vm1061_vm11, %v3915_v23  ;;  %4396 = vmatprep.mubr.msk.f32.mxu0 %vm4515_vm14, %v4507_v50 }
 0x46c   : > { %4397 = vmatmul.mubr.msk.f32.vlgmr.msra.gmra.mrb[4].mxu0 %vm2604_vm0, %v2582_v17 }
 0x53b   : > { %v3994_v0 = vpop.f32.mrb[2].mxu0 }
 0x53c   : > { %v4078_v28 = vmul.f32 %v4076_v63, %v3994_v0  ;;  %v3996_v1 = vpop.f32.mrb[3].mxu0 }
 0x53d   : > { %v4079_v8 = vmul.f32 %v4076_v63, %v3996_v1 }
 0x53e   : > { %v4087_v5 = vadd.f32 %v4085_v6, %v4078_v28 }
 0x53f   : > { %v4088_v3 = vadd.f32 %v4085_v6, %v4079_v8  ;;  %v4065_v40 = vpop.f32.mrb[4].mxu0 }
 0x540   : > { %v4090_v12 = vmax.f32 %v4087_v5, 0.0  ;;  %v4080_v30 = vmul.f32 %v4076_v63, %v4065_v40  ;;  %v4398_v38 = vpop.f32.mrb[5].mxu0 }
 0x541   : > { %v4091_v21 = vmax.f32 %v4088_v3, 0.0 }
 0x542   : > { %v4089_v33 = vadd.f32 %v4085_v6, %v4080_v30 }
 0x543   : > { %v4096_v49 = vcombine.low %v4090_v12, %v4091_v21 }
 0x544   : > { %v4092_v54 = vmax.f32 %v4089_v33, 0.0 }
 0x545   : > { %4097 = vrot.lane.b32.xlu1 %v4096_v49, %s4506_s17 }
 0x546   : > { %4099 = vrot.lane.b32.xlu0 %v4092_v54, %s4506_s17 }
 0x5b7   : > { %v4098_v50 = vpop.permute.xlu1 %4097 }
 0x5b8   : > { %v4101_v31 = vrot.slane %v4098_v50, 4  ;;  %v4100_v58 = vpop.permute.xlu0 %4099 }
 0x5b9   : > { %v4102_v61 = vrot.slane %v4100_v58, 4 }
 0x5bb   : > { %v4103_v9 = vsel %vm1061_vm11, %v4101_v31, %v4102_v61 }
 0x5bc   : > { %v4104_v60 = vsel %vm1042_vm10, %v4098_v50, %v4103_v9 }
 0x5bd   : > { %4106 = vst [vmem:[%s433_s16] sm:$0xff] %v4104_v60 }
 0x5be PF: > { %s22_s21 = sadd.s32 1, %s4498_s21  }
 0x5bf   : > { %p19_p4 = scmp.ge.s32.totalorder %s22_s21, 4  }
 0x5c1   :  { %21 = sbr.rel (!%p19_p4) target bundleno = 1 (0x1), region = 101 }

</bundles_post_ra>
